<compile_context>
chip_gen: v7x
topology: tpu7x:2x2x1
jax: 0.10.0
libtpu: 0.0.40
codegen_flags: <defaults>
</compile_context>

<pallas_src>
import functools

import jax
import jax.numpy as jnp
from jax.experimental import pallas as pl
from jax.experimental.pallas import tpu as pltpu

EPS = 1e-5
NEG = -1e9


def _dot(a, b):
    return jnp.dot(a, b, preferred_element_type=jnp.float32)


def _dot_nt(a, b):
    # a @ b.T without materializing a transpose.
    return jax.lax.dot_general(
        a, b, (((1,), (1,)), ((), ())), preferred_element_type=jnp.float32)


def rmkv_kernel(comb_ref,
                ln_g_ref, ln_b_ref,
                wqkv_ref, bqkv_ref, wo_ref, bo_ref,
                poolq_ref,
                wih_ref, whh_ref, bih_ref, bhh_ref,
                newx_ref, newmem_ref,
                cn_ref, acc_ref,
                *, mem_real):
    h = pl.program_id(1)
    num_heads = pl.num_programs(1)

    T, D = comb_ref.shape          # T = mem_pad + seq
    Mp = newmem_ref.shape[0]       # padded memory rows (multiple of 8)
    S = newx_ref.shape[0]
    hd = wo_ref.shape[0]
    cdt = wqkv_ref.dtype           # MXU operand dtype (f32 or bf16)

    # --- once per batch element: LayerNorm over [memory ; tokens] ------------
    @pl.when(h == 0)
    def _():
        comb = comb_ref[...].astype(jnp.float32)                  # (T, D)
        mu = jnp.mean(comb, axis=-1, keepdims=True)
        var = jnp.mean((comb - mu) ** 2, axis=-1, keepdims=True)
        cn = (comb - mu) * jax.lax.rsqrt(var + EPS) * ln_g_ref[...] + ln_b_ref[...]
        cn_ref[...] = cn.astype(cdt)
        acc_ref[...] = jnp.zeros_like(acc_ref)

    cn = cn_ref[...]                                              # (T, D) cdt

    # --- per-head fused QKV projection (1/sqrt(hd) folded into Wq/bq) --------
    qkv = _dot(cn, wqkv_ref[...]) + bqkv_ref[...]                 # (T, 3hd) f32
    q = qkv[:, :hd].astype(cdt)
    k = qkv[:, hd:2 * hd].astype(cdt)
    v = qkv[:, 2 * hd:].astype(cdt)

    # --- causal + memory + pad-column mask generated from iota ---------------
    row = jax.lax.broadcasted_iota(jnp.int32, (T, T), 0)
    col = jax.lax.broadcasted_iota(jnp.int32, (T, T), 1)
    banned = ((row >= Mp) & (col > row)) | ((col >= mem_real) & (col < Mp))

    # --- attention for this head (only a (T, T) score tile is live) ----------
    s = _dot_nt(q, k)                                             # (T, T) f32
    s = jnp.where(banned, jnp.float32(NEG), s)
    m = jnp.max(s, axis=-1, keepdims=True)
    e = jnp.exp(s - m)
    p = e * pl.reciprocal(jnp.sum(e, axis=-1, keepdims=True), approx=True)
    ctx = _dot(p.astype(cdt), v)                                  # (T, hd) f32

    # --- output projection accumulated over heads into VMEM scratch ----------
    acc_ref[...] += _dot(ctx.astype(cdt), wo_ref[...])            # (T, D) f32

    # --- last head: pooling + GRU + stores ------------------------------------
    @pl.when(h == num_heads - 1)
    def _():
        out = acc_ref[...] + bo_ref[...]                          # (T, D) f32
        upd_mem = out[:Mp]                                        # (Mp, D) aligned view
        att_x = out[Mp:]                                          # (S, D) aligned view
        ax = att_x.astype(cdt)                                    # cast once, reused

        # attention pooling (pool queries pre-scaled by D**-0.5 host-side,
        # pad query rows are zero and their results are discarded by the wrapper)
        ps = _dot_nt(poolq_ref[...], ax)                          # (Mp, S)
        pm = jnp.max(ps, axis=-1, keepdims=True)
        pe = jnp.exp(ps - pm)
        pw = pe * pl.reciprocal(jnp.sum(pe, axis=-1, keepdims=True), approx=True)
        summary = _dot(pw.astype(cdt), ax)                        # (Mp, D)

        # GRU cell update (PyTorch gate order r, z, n); elementwise math in f32
        gi = _dot(summary.astype(cdt), wih_ref[...]) + bih_ref[...]   # (Mp, 3D)
        gh = _dot(upd_mem.astype(cdt), whh_ref[...]) + bhh_ref[...]   # (Mp, 3D)
        r = jax.nn.sigmoid(gi[:, :D] + gh[:, :D])
        z = jax.nn.sigmoid(gi[:, D:2 * D] + gh[:, D:2 * D])
        n = jnp.tanh(gi[:, 2 * D:] + r * gh[:, 2 * D:])
        new_mem = (1.0 - z) * n + z * upd_mem

        # residual on tokens, read directly from the (unnormalized) combined input
        x_res = comb_ref[pl.ds(Mp, S), :].astype(jnp.float32)
        newx_ref[...] = (att_x + x_res).astype(newx_ref.dtype)
        newmem_ref[...] = new_mem.astype(newmem_ref.dtype)


def _prepare_params(params, num_heads, mem_pad, mxu_dtype):
    """Host-side re-layout: per-head fused QKV, folded scales, pad pool queries."""
    D = params["wq"].shape[0]
    H = num_heads
    hd = D // H
    scale = hd ** -0.5

    def per_head_w(w):                       # (D, D) -> (H, D, hd)
        return w.reshape(D, H, hd).transpose(1, 0, 2)

    def per_head_b(b):                       # (1, D) -> (H, 1, hd)
        return b.reshape(H, hd)[:, None, :]

    # NOTE: q/k/v slabs start at lane offsets {0, hd, 2hd}; at production sizes
    # choose hd as a multiple of 128 so the slices are lane-aligned views.
    w_qkv = jnp.concatenate(
        [per_head_w(params["wq"] * scale), per_head_w(params["wk"]),
         per_head_w(params["wv"])], axis=-1)                      # (H, D, 3hd)
    b_qkv = jnp.concatenate(
        [per_head_b(params["bq"] * scale), per_head_b(params["bk"]),
         per_head_b(params["bv"])], axis=-1)                      # (H, 1, 3hd)
    w_o = params["wo"].reshape(H, hd, D)                          # (H, hd, D)

    M = params["pool_q"].shape[0]
    pool_q = params["pool_q"] * (D ** -0.5)
    if mem_pad > M:
        pool_q = jnp.pad(pool_q, ((0, mem_pad - M), (0, 0)))      # zero pad queries

    mx = lambda a: a.astype(mxu_dtype)       # MXU operands only; biases stay f32
    return [
        params["ln_g"], params["ln_b"],
        mx(w_qkv), b_qkv, mx(w_o), params["bo"],
        mx(pool_q),
        mx(params["w_ih"]), mx(params["w_hh"]), params["b_ih"], params["b_hh"],
    ]


def rmkv_block_pallas(x, memory, params, num_heads, *, mxu_dtype=jnp.bfloat16):
    B, S, D = x.shape
    M = memory.shape[1]
    H = num_heads
    hd = D // H
    Mp = ((M + 7) // 8) * 8            # sublane-align the memory/token boundary
    Tp = Mp + S

    mem_p = memory if Mp == M else jnp.pad(memory, ((0, 0), (0, Mp - M), (0, 0)))
    combined = jnp.concatenate([mem_p, x], axis=1)                # (B, Tp, D)

    (ln_g, ln_b, w_qkv, b_qkv, w_o, b_o, pool_q,
     w_ih, w_hh, b_ih, b_hh) = _prepare_params(params, H, Mp, mxu_dtype)

    # per-generation VMEM budget (v7x: 64 MiB, v5e/v6e: 128 MiB)
    try:
        vmem_cap = pltpu.get_tpu_info().vmem_capacity_bytes
    except Exception:
        vmem_cap = 64 * 1024 * 1024
    vmem_limit = min(int(vmem_cap * 0.8), 100 * 1024 * 1024)

    sq = pl.Squeezed()
    out_shape = (jax.ShapeDtypeStruct((B, S, D), x.dtype),
                 jax.ShapeDtypeStruct((B, Mp, D), x.dtype))
    out_specs = (pl.BlockSpec((sq, S, D), lambda b, h: (b, 0, 0)),
                 pl.BlockSpec((sq, Mp, D), lambda b, h: (b, 0, 0)))

    kernel = functools.partial(rmkv_kernel, mem_real=M)

    def build(single_buffer):
        kw = {"pipeline_mode": pl.Buffered(1)} if single_buffer else {}

        def const_spec(arr):
            return pl.BlockSpec(arr.shape, lambda b, h, _n=arr.ndim: (0,) * _n, **kw)

        in_specs = [
            pl.BlockSpec((sq, Tp, D), lambda b, h: (b, 0, 0)),    # combined [mem;x]
            const_spec(ln_g), const_spec(ln_b),
            pl.BlockSpec((sq, D, 3 * hd), lambda b, h: (h, 0, 0)),  # per-head Wqkv
            pl.BlockSpec((sq, 1, 3 * hd), lambda b, h: (h, 0, 0)),  # per-head bqkv
            pl.BlockSpec((sq, hd, D), lambda b, h: (h, 0, 0)),      # per-head Wo
            const_spec(b_o), const_spec(pool_q),
            const_spec(w_ih), const_spec(w_hh), const_spec(b_ih), const_spec(b_hh),
        ]
        return pl.pallas_call(
            kernel,
            grid=(B, H),
            in_specs=in_specs,
            out_specs=out_specs,
            out_shape=out_shape,
            scratch_shapes=[pltpu.VMEM((Tp, D), mxu_dtype),   # normalized input
                            pltpu.VMEM((Tp, D), jnp.float32)],  # head-sum accumulator
            compiler_params=pltpu.CompilerParams(
                dimension_semantics=("parallel", "arbitrary"),
                vmem_limit_bytes=vmem_limit),
        )

    args = (combined, ln_g, ln_b, w_qkv, b_qkv, w_o, b_o, pool_q,
            w_ih, w_hh, b_ih, b_hh)
    try:
        new_x, new_mem = build(True)(*args)
    except Exception:
        # TODO(synk): this jax version rejected pl.Buffered(1) single-buffering;
        # falling back to default double-buffered constant weight blocks.
        new_x, new_mem = build(False)(*args)

    return new_x, new_mem[:, :M]


# ------------------------- pure-JAX reference ------------------------------ #

def build_causal_mask(memory_tokens, seq_len):
    # Matches get_causal_mask(..., attention_mask=None): (T, T) additive mask.
    T = memory_tokens + seq_len
    tok_mask = jnp.triu(jnp.ones((seq_len, seq_len), jnp.float32), k=1) * NEG
    mask = jnp.zeros((T, T), jnp.float32)
    mask = mask.at[memory_tokens:, memory_tokens:].set(tok_mask)
    return mask


def rmkv_block_ref(x, memory, params, num_heads):
    B, S, D = x.shape
    M = memory.shape[1]
    T = M + S
    H = num_heads
    hd = D // H
    mask = build_causal_mask(M, S)

    c = jnp.concatenate([memory, x], axis=1)
    mu = jnp.mean(c, -1, keepdims=True)
    var = jnp.mean((c - mu) ** 2, -1, keepdims=True)
    cn = (c - mu) / jnp.sqrt(var + EPS) * params["ln_g"] + params["ln_b"]

    q = cn @ params["wq"] + params["bq"]
    k = cn @ params["wk"] + params["bk"]
    v = cn @ params["wv"] + params["bv"]

    def split(t):
        return t.reshape(B, T, H, hd).transpose(0, 2, 1, 3)

    qh, kh, vh = split(q), split(k), split(v)
    scores = jnp.einsum("bhqd,bhkd->bhqk", qh, kh) * hd ** -0.5
    scores = scores + mask[None, None]
    attn = jax.nn.softmax(scores, -1)
    ctx = jnp.einsum("bhqk,bhkd->bhqd", attn, vh).transpose(0, 2, 1, 3).reshape(B, T, D)
    out = ctx @ params["wo"] + params["bo"]

    upd_mem = out[:, :M]
    new_x = out[:, M:]

    ps = jnp.einsum("md,bsd->bms", params["pool_q"], new_x) * D ** -0.5
    pw = jax.nn.softmax(ps, -1)
    summary = jnp.einsum("bms,bsd->bmd", pw, new_x)

    gi = summary @ params["w_ih"] + params["b_ih"]
    gh = upd_mem @ params["w_hh"] + params["b_hh"]
    r = jax.nn.sigmoid(gi[..., :D] + gh[..., :D])
    z = jax.nn.sigmoid(gi[..., D:2 * D] + gh[..., D:2 * D])
    n = jnp.tanh(gi[..., 2 * D:] + r * gh[..., 2 * D:])
    new_mem = (1 - z) * n + z * upd_mem
    return new_x + x, new_mem


def init_params(key, embed_dim, memory_tokens):
    D = embed_dim
    ks = jax.random.split(key, 12)
    s = 0.05
    return {
        "ln_g": jnp.ones((1, D), jnp.float32),
        "ln_b": jnp.zeros((1, D), jnp.float32),
        # nn.Linear(D, D): stored transposed as (in, out)
        "wq": jax.random.normal(ks[0], (D, D), jnp.float32) * s,
        "bq": jax.random.normal(ks[1], (1, D), jnp.float32) * s,
        "wk": jax.random.normal(ks[2], (D, D), jnp.float32) * s,
        "bk": jax.random.normal(ks[3], (1, D), jnp.float32) * s,
        "wv": jax.random.normal(ks[4], (D, D), jnp.float32) * s,
        "bv": jax.random.normal(ks[5], (1, D), jnp.float32) * s,
        "wo": jax.random.normal(ks[6], (D, D), jnp.float32) * s,
        "bo": jax.random.normal(ks[7], (1, D), jnp.float32) * s,
        # AttentionPooling query: (memory_tokens, D)
        "pool_q": jax.random.normal(ks[8], (memory_tokens, D), jnp.float32),
        # GRUCell(D, D): torch weight_ih/hh (3D, D) -> transposed (D, 3D)
        "w_ih": jax.random.normal(ks[9], (D, 3 * D), jnp.float32) * s,
        "w_hh": jax.random.normal(ks[10], (D, 3 * D), jnp.float32) * s,
        "b_ih": jax.random.normal(ks[11], (1, 3 * D), jnp.float32) * s,
        "b_hh": jnp.zeros((1, 3 * D), jnp.float32),
    }


if __name__ == "__main__":
    B, S, M, D, H = 2, 8, 4, 32, 4   # M=4 exercises the sublane-padding path

    key = jax.random.PRNGKey(0)
    kx, km, kp = jax.random.split(key, 3)
    x = jax.random.normal(kx, (B, S, D), jnp.float32)
    memory = jax.random.normal(km, (B, M, D), jnp.float32)
    params = init_params(kp, D, M)

    ref_x, ref_mem = rmkv_block_ref(x, memory, params, H)

    # exact-precision path (f32 MXU operands)
    new_x, new_mem = rmkv_block_pallas(x, memory, params, H, mxu_dtype=jnp.float32)
    jax.block_until_ready((new_x, new_mem))
    assert jnp.allclose(new_x, ref_x, rtol=1e-3, atol=1e-3), "token output mismatch (f32)"
    assert jnp.allclose(new_mem, ref_mem, rtol=1e-3, atol=1e-3), "memory output mismatch (f32)"

    # default fast path: bf16 MXU operands; looser tolerance for reduced precision
    bx, bm = rmkv_block_pallas(x, memory, params, H)
    jax.block_until_ready((bx, bm))
    assert jnp.allclose(bx, ref_x, rtol=5e-2, atol=5e-2), "token output mismatch (bf16)"
    assert jnp.allclose(bm, ref_mem, rtol=5e-2, atol=5e-2), "memory output mismatch (bf16)"

    print("KERNEL_OK")
</pallas_src>

<mosaic_0001>
module attributes {stable_mosaic.version = 11 : i64} {
  func.func @rmkv_kernel(%arg0: i32, %arg1: i32, %arg2: memref<1x16x32xf32, #tpu.memory_space<vmem>>, %arg3: memref<1x32xf32, #tpu.memory_space<vmem>>, %arg4: memref<1x32xf32, #tpu.memory_space<vmem>>, %arg5: memref<1x32x24xf32, #tpu.memory_space<vmem>>, %arg6: memref<1x1x24xf32, #tpu.memory_space<vmem>>, %arg7: memref<1x8x32xf32, #tpu.memory_space<vmem>>, %arg8: memref<1x32xf32, #tpu.memory_space<vmem>>, %arg9: memref<8x32xf32, #tpu.memory_space<vmem>>, %arg10: memref<32x96xf32, #tpu.memory_space<vmem>>, %arg11: memref<32x96xf32, #tpu.memory_space<vmem>>, %arg12: memref<1x96xf32, #tpu.memory_space<vmem>>, %arg13: memref<1x96xf32, #tpu.memory_space<vmem>>, %arg14: memref<1x8x32xf32, #tpu.memory_space<vmem>>, %arg15: memref<1x8x32xf32, #tpu.memory_space<vmem>>, %arg16: memref<16x32xf32, #tpu.memory_space<vmem>>, %arg17: memref<16x32xf32, #tpu.memory_space<vmem>>) attributes {dimension_semantics = [#tpu.dimension_semantics<parallel>, #tpu.dimension_semantics<arbitrary>], iteration_bounds = array<i64: 2, 4>, scalar_prefetch = 0 : i64, scratch_operands = 2 : i64, tpu.core_type = #tpu.core_type<tc>, window_params = [{transform_indices = @transform_0, window_bounds = array<i64: 1, 16, 32>}, {pipeline_mode = #tpu.pipeline_mode<synchronous>, transform_indices = @transform_1, window_bounds = array<i64: 1, 32>}, {pipeline_mode = #tpu.pipeline_mode<synchronous>, transform_indices = @transform_2, window_bounds = array<i64: 1, 32>}, {transform_indices = @transform_3, window_bounds = array<i64: 1, 32, 24>}, {transform_indices = @transform_4, window_bounds = array<i64: 1, 1, 24>}, {transform_indices = @transform_5, window_bounds = array<i64: 1, 8, 32>}, {pipeline_mode = #tpu.pipeline_mode<synchronous>, transform_indices = @transform_6, window_bounds = array<i64: 1, 32>}, {pipeline_mode = #tpu.pipeline_mode<synchronous>, transform_indices = @transform_7, window_bounds = array<i64: 8, 32>}, {pipeline_mode = #tpu.pipeline_mode<synchronous>, transform_indices = @transform_8, window_bounds = array<i64: 32, 96>}, {pipeline_mode = #tpu.pipeline_mode<synchronous>, transform_indices = @transform_9, window_bounds = array<i64: 32, 96>}, {pipeline_mode = #tpu.pipeline_mode<synchronous>, transform_indices = @transform_10, window_bounds = array<i64: 1, 96>}, {pipeline_mode = #tpu.pipeline_mode<synchronous>, transform_indices = @transform_11, window_bounds = array<i64: 1, 96>}, {transform_indices = @transform_12, window_bounds = array<i64: 1, 8, 32>}, {transform_indices = @transform_13, window_bounds = array<i64: 1, 8, 32>}]} {
    %c0_i32 = arith.constant 0 : i32
    %0 = arith.cmpi eq, %arg1, %c0_i32 : i32
    %1 = arith.extui %0 : i1 to i32
    %c0_i32_0 = arith.constant 0 : i32
    %2 = arith.cmpi ne, %1, %c0_i32_0 : i32
    scf.if %2 {
      %c0_23 = arith.constant 0 : index
      %c0_24 = arith.constant 0 : index
      %c0_25 = arith.constant 0 : index
      %49 = vector.load %arg2[%c0_23, %c0_24, %c0_25] : memref<1x16x32xf32, #tpu.memory_space<vmem>>, vector<1x16x32xf32>
      %50 = vector.shape_cast %49 : vector<1x16x32xf32> to vector<16x32xf32>
      %cst_26 = arith.constant dense<0.000000e+00> : vector<16xf32>
      %51 = vector.multi_reduction <add>, %50, %cst_26 [1] : vector<16x32xf32> to vector<16xf32>
      %52 = vector.shape_cast %51 : vector<16xf32> to vector<16x1xf32>
      %cst_27 = arith.constant 3.200000e+01 : f32
      %53 = vector.broadcast %cst_27 : f32 to vector<16x1xf32>
      %54 = arith.divf %52, %53 : vector<16x1xf32>
      %55 = vector.broadcast %54 : vector<16x1xf32> to vector<16x32xf32>
      %56 = arith.subf %50, %55 : vector<16x32xf32>
      %57 = arith.mulf %56, %56 : vector<16x32xf32>
      %cst_28 = arith.constant dense<0.000000e+00> : vector<16xf32>
      %58 = vector.multi_reduction <add>, %57, %cst_28 [1] : vector<16x32xf32> to vector<16xf32>
      %59 = vector.shape_cast %58 : vector<16xf32> to vector<16x1xf32>
      %cst_29 = arith.constant 3.200000e+01 : f32
      %60 = vector.broadcast %cst_29 : f32 to vector<16x1xf32>
      %61 = arith.divf %59, %60 : vector<16x1xf32>
      %62 = vector.broadcast %54 : vector<16x1xf32> to vector<16x32xf32>
      %63 = arith.subf %50, %62 : vector<16x32xf32>
      %cst_30 = arith.constant 9.99999974E-6 : f32
      %64 = vector.broadcast %cst_30 : f32 to vector<16x1xf32>
      %65 = arith.addf %61, %64 : vector<16x1xf32>
      %66 = math.rsqrt %65 : vector<16x1xf32>
      %67 = vector.broadcast %66 : vector<16x1xf32> to vector<16x32xf32>
      %68 = arith.mulf %63, %67 : vector<16x32xf32>
      %c0_31 = arith.constant 0 : index
      %c0_32 = arith.constant 0 : index
      %69 = vector.load %arg3[%c0_31, %c0_32] : memref<1x32xf32, #tpu.memory_space<vmem>>, vector<1x32xf32>
      %70 = vector.broadcast %69 : vector<1x32xf32> to vector<16x32xf32>
      %71 = arith.mulf %68, %70 : vector<16x32xf32>
      %c0_33 = arith.constant 0 : index
      %c0_34 = arith.constant 0 : index
      %72 = vector.load %arg4[%c0_33, %c0_34] : memref<1x32xf32, #tpu.memory_space<vmem>>, vector<1x32xf32>
      %73 = vector.broadcast %72 : vector<1x32xf32> to vector<16x32xf32>
      %74 = arith.addf %71, %73 : vector<16x32xf32>
      %c0_35 = arith.constant 0 : index
      %c0_36 = arith.constant 0 : index
      %75 = vector.load %arg16[%c0_35, %c0_36] : memref<16x32xf32, #tpu.memory_space<vmem>>, vector<16x32xf32>
      tpu.vector_store %arg16[%c0_35, %c0_36], %74 {strides = array<i32>} : memref<16x32xf32, #tpu.memory_space<vmem>>, vector<16x32xf32>,
      %cst_37 = arith.constant 0.000000e+00 : f32
      %76 = vector.broadcast %cst_37 : f32 to vector<16x32xf32>
      %c0_38 = arith.constant 0 : index
      %c0_39 = arith.constant 0 : index
      %77 = vector.load %arg17[%c0_38, %c0_39] : memref<16x32xf32, #tpu.memory_space<vmem>>, vector<16x32xf32>
      tpu.vector_store %arg17[%c0_38, %c0_39], %76 {strides = array<i32>} : memref<16x32xf32, #tpu.memory_space<vmem>>, vector<16x32xf32>,
    } else {
    }
    %c0 = arith.constant 0 : index
    %c0_1 = arith.constant 0 : index
    %3 = vector.load %arg16[%c0, %c0_1] : memref<16x32xf32, #tpu.memory_space<vmem>>, vector<16x32xf32>
    %c0_2 = arith.constant 0 : index
    %c0_3 = arith.constant 0 : index
    %c0_4 = arith.constant 0 : index
    %4 = vector.load %arg5[%c0_2, %c0_3, %c0_4] : memref<1x32x24xf32, #tpu.memory_space<vmem>>, vector<1x32x24xf32>
    %5 = vector.shape_cast %4 : vector<1x32x24xf32> to vector<32x24xf32>
    %cst = arith.constant dense<0.000000e+00> : vector<16x24xf32>
    %6 = tpu.matmul %3, %5, %cst {dimension_numbers = #tpu.dot_dimension_numbers<[1], [0], [0], [1], [0, 0, 1, 1], [], []>} : vector<16x32xf32>, vector<32x24xf32>, vector<16x24xf32> -> vector<16x24xf32>
    %c0_5 = arith.constant 0 : index
    %c0_6 = arith.constant 0 : index
    %c0_7 = arith.constant 0 : index
    %7 = vector.load %arg6[%c0_5, %c0_6, %c0_7] : memref<1x1x24xf32, #tpu.memory_space<vmem>>, vector<1x1x24xf32>
    %8 = vector.shape_cast %7 : vector<1x1x24xf32> to vector<1x24xf32>
    %9 = vector.broadcast %8 : vector<1x24xf32> to vector<16x24xf32>
    %10 = arith.addf %6, %9 : vector<16x24xf32>
    %11 = vector.extract_strided_slice %10 {offsets = [0, 0], sizes = [16, 8], strides = [1, 1]} : vector<16x24xf32> to vector<16x8xf32>
    %12 = vector.extract_strided_slice %10 {offsets = [0, 8], sizes = [16, 8], strides = [1, 1]} : vector<16x24xf32> to vector<16x8xf32>
    %13 = vector.extract_strided_slice %10 {offsets = [0, 16], sizes = [16, 8], strides = [1, 1]} : vector<16x24xf32> to vector<16x8xf32>
    %14 = tpu.iota {dimensions = array<i32: 0>} : vector<16x16xi32>
    %15 = tpu.iota {dimensions = array<i32: 1>} : vector<16x16xi32>
    %c8_i32 = arith.constant 8 : i32
    %16 = vector.broadcast %c8_i32 : i32 to vector<16x16xi32>
    %17 = arith.cmpi sge, %14, %16 : vector<16x16xi32>
    %18 = arith.cmpi sgt, %15, %14 : vector<16x16xi32>
    %19 = arith.andi %17, %18 : vector<16x16xi1>
    %c4_i32 = arith.constant 4 : i32
    %20 = vector.broadcast %c4_i32 : i32 to vector<16x16xi32>
    %21 = arith.cmpi sge, %15, %20 : vector<16x16xi32>
    %c8_i32_8 = arith.constant 8 : i32
    %22 = vector.broadcast %c8_i32_8 : i32 to vector<16x16xi32>
    %23 = arith.cmpi slt, %15, %22 : vector<16x16xi32>
    %24 = arith.andi %21, %23 : vector<16x16xi1>
    %25 = arith.ori %19, %24 : vector<16x16xi1>
    %cst_9 = arith.constant dense<0.000000e+00> : vector<16x16xf32>
    %26 = tpu.matmul %11, %12, %cst_9 {dimension_numbers = #tpu.dot_dimension_numbers<[1], [1], [0], [0], [0, 0, 1, 0], [], []>} : vector<16x8xf32>, vector<16x8xf32>, vector<16x16xf32> -> vector<16x16xf32>
    %cst_10 = arith.constant -1.000000e+09 : f32
    %27 = vector.broadcast %cst_10 : f32 to vector<16x16xf32>
    %28 = arith.select %25, %27, %26 : vector<16x16xi1>, vector<16x16xf32>
    %cst_11 = arith.constant dense<0xFF800000> : vector<16xf32>
    %29 = vector.multi_reduction <maximumf>, %28, %cst_11 [1] : vector<16x16xf32> to vector<16xf32>
    %30 = vector.shape_cast %29 : vector<16xf32> to vector<16x1xf32>
    %31 = vector.broadcast %30 : vector<16x1xf32> to vector<16x16xf32>
    %32 = arith.subf %28, %31 : vector<16x16xf32>
    %33 = math.exp %32 : vector<16x16xf32>
    %cst_12 = arith.constant dense<0.000000e+00> : vector<16xf32>
    %34 = vector.multi_reduction <add>, %33, %cst_12 [1] : vector<16x16xf32> to vector<16xf32>
    %35 = vector.shape_cast %34 : vector<16xf32> to vector<16x1xf32>
    %36 = tpu.reciprocal %35 {approx = true} : vector<16x1xf32> -> vector<16x1xf32>
    %37 = vector.broadcast %36 : vector<16x1xf32> to vector<16x16xf32>
    %38 = arith.mulf %33, %37 : vector<16x16xf32>
    %cst_13 = arith.constant dense<0.000000e+00> : vector<16x8xf32>
    %39 = tpu.matmul %38, %13, %cst_13 {dimension_numbers = #tpu.dot_dimension_numbers<[1], [0], [0], [1], [0, 0, 1, 1], [], []>} : vector<16x16xf32>, vector<16x8xf32>, vector<16x8xf32> -> vector<16x8xf32>
    %c0_14 = arith.constant 0 : index
    %c0_15 = arith.constant 0 : index
    %40 = vector.load %arg17[%c0_14, %c0_15] : memref<16x32xf32, #tpu.memory_space<vmem>>, vector<16x32xf32>
    %c0_16 = arith.constant 0 : index
    %c0_17 = arith.constant 0 : index
    %c0_18 = arith.constant 0 : index
    %41 = vector.load %arg7[%c0_16, %c0_17, %c0_18] : memref<1x8x32xf32, #tpu.memory_space<vmem>>, vector<1x8x32xf32>
    %42 = vector.shape_cast %41 : vector<1x8x32xf32> to vector<8x32xf32>
    %cst_19 = arith.constant dense<0.000000e+00> : vector<16x32xf32>
    %43 = tpu.matmul %39, %42, %cst_19 {dimension_numbers = #tpu.dot_dimension_numbers<[1], [0], [0], [1], [0, 0, 1, 1], [], []>} : vector<16x8xf32>, vector<8x32xf32>, vector<16x32xf32> -> vector<16x32xf32>
    %44 = arith.addf %40, %43 : vector<16x32xf32>
    %c0_20 = arith.constant 0 : index
    %c0_21 = arith.constant 0 : index
    %45 = vector.load %arg17[%c0_20, %c0_21] : memref<16x32xf32, #tpu.memory_space<vmem>>, vector<16x32xf32>
    tpu.vector_store %arg17[%c0_20, %c0_21], %44 {strides = array<i32>} : memref<16x32xf32, #tpu.memory_space<vmem>>, vector<16x32xf32>,
    %c3_i32 = arith.constant 3 : i32
    %46 = arith.cmpi eq, %arg1, %c3_i32 : i32
    %47 = arith.extui %46 : i1 to i32
    %c0_i32_22 = arith.constant 0 : i32
    %48 = arith.cmpi ne, %47, %c0_i32_22 : i32
    scf.if %48 {
      %c0_23 = arith.constant 0 : index
      %c0_24 = arith.constant 0 : index
      %49 = vector.load %arg17[%c0_23, %c0_24] : memref<16x32xf32, #tpu.memory_space<vmem>>, vector<16x32xf32>
      %c0_25 = arith.constant 0 : index
      %c0_26 = arith.constant 0 : index
      %50 = vector.load %arg8[%c0_25, %c0_26] : memref<1x32xf32, #tpu.memory_space<vmem>>, vector<1x32xf32>
      %51 = vector.broadcast %50 : vector<1x32xf32> to vector<16x32xf32>
      %52 = arith.addf %49, %51 : vector<16x32xf32>
      %53 = vector.extract_strided_slice %52 {offsets = [0, 0], sizes = [8, 32], strides = [1, 1]} : vector<16x32xf32> to vector<8x32xf32>
      %54 = vector.extract_strided_slice %52 {offsets = [8, 0], sizes = [8, 32], strides = [1, 1]} : vector<16x32xf32> to vector<8x32xf32>
      %c0_27 = arith.constant 0 : index
      %c0_28 = arith.constant 0 : index
      %55 = vector.load %arg9[%c0_27, %c0_28] : memref<8x32xf32, #tpu.memory_space<vmem>>, vector<8x32xf32>
      %cst_29 = arith.constant dense<0.000000e+00> : vector<8x8xf32>
      %56 = tpu.matmul %55, %54, %cst_29 {dimension_numbers = #tpu.dot_dimension_numbers<[1], [1], [0], [0], [0, 0, 1, 0], [], []>} : vector<8x32xf32>, vector<8x32xf32>, vector<8x8xf32> -> vector<8x8xf32>
      %cst_30 = arith.constant dense<0xFF800000> : vector<8xf32>
      %57 = vector.multi_reduction <maximumf>, %56, %cst_30 [1] : vector<8x8xf32> to vector<8xf32>
      %58 = vector.shape_cast %57 : vector<8xf32> to vector<8x1xf32>
      %59 = vector.broadcast %58 : vector<8x1xf32> to vector<8x8xf32>
      %60 = arith.subf %56, %59 : vector<8x8xf32>
      %61 = math.exp %60 : vector<8x8xf32>
      %cst_31 = arith.constant dense<0.000000e+00> : vector<8xf32>
      %62 = vector.multi_reduction <add>, %61, %cst_31 [1] : vector<8x8xf32> to vector<8xf32>
      %63 = vector.shape_cast %62 : vector<8xf32> to vector<8x1xf32>
      %64 = tpu.reciprocal %63 {approx = true} : vector<8x1xf32> -> vector<8x1xf32>
      %65 = vector.broadcast %64 : vector<8x1xf32> to vector<8x8xf32>
      %66 = arith.mulf %61, %65 : vector<8x8xf32>
      %cst_32 = arith.constant dense<0.000000e+00> : vector<8x32xf32>
      %67 = tpu.matmul %66, %54, %cst_32 {dimension_numbers = #tpu.dot_dimension_numbers<[1], [0], [0], [1], [0, 0, 1, 1], [], []>} : vector<8x8xf32>, vector<8x32xf32>, vector<8x32xf32> -> vector<8x32xf32>
      %c0_33 = arith.constant 0 : index
      %c0_34 = arith.constant 0 : index
      %68 = vector.load %arg10[%c0_33, %c0_34] : memref<32x96xf32, #tpu.memory_space<vmem>>, vector<32x96xf32>
      %cst_35 = arith.constant dense<0.000000e+00> : vector<8x96xf32>
      %69 = tpu.matmul %67, %68, %cst_35 {dimension_numbers = #tpu.dot_dimension_numbers<[1], [0], [0], [1], [0, 0, 1, 1], [], []>} : vector<8x32xf32>, vector<32x96xf32>, vector<8x96xf32> -> vector<8x96xf32>
      %c0_36 = arith.constant 0 : index
      %c0_37 = arith.constant 0 : index
      %70 = vector.load %arg12[%c0_36, %c0_37] : memref<1x96xf32, #tpu.memory_space<vmem>>, vector<1x96xf32>
      %71 = vector.broadcast %70 : vector<1x96xf32> to vector<8x96xf32>
      %72 = arith.addf %69, %71 : vector<8x96xf32>
      %c0_38 = arith.constant 0 : index
      %c0_39 = arith.constant 0 : index
      %73 = vector.load %arg11[%c0_38, %c0_39] : memref<32x96xf32, #tpu.memory_space<vmem>>, vector<32x96xf32>
      %cst_40 = arith.constant dense<0.000000e+00> : vector<8x96xf32>
      %74 = tpu.matmul %53, %73, %cst_40 {dimension_numbers = #tpu.dot_dimension_numbers<[1], [0], [0], [1], [0, 0, 1, 1], [], []>} : vector<8x32xf32>, vector<32x96xf32>, vector<8x96xf32> -> vector<8x96xf32>
      %c0_41 = arith.constant 0 : index
      %c0_42 = arith.constant 0 : index
      %75 = vector.load %arg13[%c0_41, %c0_42] : memref<1x96xf32, #tpu.memory_space<vmem>>, vector<1x96xf32>
      %76 = vector.broadcast %75 : vector<1x96xf32> to vector<8x96xf32>
      %77 = arith.addf %74, %76 : vector<8x96xf32>
      %78 = vector.extract_strided_slice %72 {offsets = [0, 0], sizes = [8, 32], strides = [1, 1]} : vector<8x96xf32> to vector<8x32xf32>
      %79 = vector.extract_strided_slice %77 {offsets = [0, 0], sizes = [8, 32], strides = [1, 1]} : vector<8x96xf32> to vector<8x32xf32>
      %80 = arith.addf %78, %79 : vector<8x32xf32>
      %81 = arith.negf %80 : vector<8x32xf32>
      %82 = math.exp %81 : vector<8x32xf32>
      %cst_43 = arith.constant 1.000000e+00 : f32
      %83 = vector.broadcast %cst_43 : f32 to vector<8x32xf32>
      %84 = arith.addf %83, %82 : vector<8x32xf32>
      %85 = arith.divf %83, %84 : vector<8x32xf32>
      %86 = vector.extract_strided_slice %72 {offsets = [0, 32], sizes = [8, 32], strides = [1, 1]} : vector<8x96xf32> to vector<8x32xf32>
      %87 = vector.extract_strided_slice %77 {offsets = [0, 32], sizes = [8, 32], strides = [1, 1]} : vector<8x96xf32> to vector<8x32xf32>
      %88 = arith.addf %86, %87 : vector<8x32xf32>
      %89 = arith.negf %88 : vector<8x32xf32>
      %90 = math.exp %89 : vector<8x32xf32>
      %cst_44 = arith.constant 1.000000e+00 : f32
      %91 = vector.broadcast %cst_44 : f32 to vector<8x32xf32>
      %92 = arith.addf %91, %90 : vector<8x32xf32>
      %93 = arith.divf %91, %92 : vector<8x32xf32>
      %94 = vector.extract_strided_slice %72 {offsets = [0, 64], sizes = [8, 32], strides = [1, 1]} : vector<8x96xf32> to vector<8x32xf32>
      %95 = vector.extract_strided_slice %77 {offsets = [0, 64], sizes = [8, 32], strides = [1, 1]} : vector<8x96xf32> to vector<8x32xf32>
      %96 = arith.mulf %85, %95 : vector<8x32xf32>
      %97 = arith.addf %94, %96 : vector<8x32xf32>
      %98 = math.tanh %97 : vector<8x32xf32>
      %cst_45 = arith.constant 1.000000e+00 : f32
      %99 = vector.broadcast %cst_45 : f32 to vector<8x32xf32>
      %100 = arith.subf %99, %93 : vector<8x32xf32>
      %101 = arith.mulf %100, %98 : vector<8x32xf32>
      %102 = arith.mulf %93, %53 : vector<8x32xf32>
      %103 = arith.addf %101, %102 : vector<8x32xf32>
      %c0_46 = arith.constant 0 : index
      %c8 = arith.constant 8 : index
      %c0_47 = arith.constant 0 : index
      %104 = vector.load %arg2[%c0_46, %c8, %c0_47] : memref<1x16x32xf32, #tpu.memory_space<vmem>>, vector<1x8x32xf32>
      %105 = vector.shape_cast %104 : vector<1x8x32xf32> to vector<8x32xf32>
      %106 = arith.addf %54, %105 : vector<8x32xf32>
      %c0_48 = arith.constant 0 : index
      %c0_49 = arith.constant 0 : index
      %c0_50 = arith.constant 0 : index
      %107 = vector.load %arg14[%c0_48, %c0_49, %c0_50] : memref<1x8x32xf32, #tpu.memory_space<vmem>>, vector<1x8x32xf32>
      %108 = vector.shape_cast %107 : vector<1x8x32xf32> to vector<8x32xf32>
      %109 = vector.shape_cast %106 : vector<8x32xf32> to vector<1x8x32xf32>
      tpu.vector_store %arg14[%c0_48, %c0_49, %c0_50], %109 {strides = array<i32>} : memref<1x8x32xf32, #tpu.memory_space<vmem>>, vector<1x8x32xf32>,
      %c0_51 = arith.constant 0 : index
      %c0_52 = arith.constant 0 : index
      %c0_53 = arith.constant 0 : index
      %110 = vector.load %arg15[%c0_51, %c0_52, %c0_53] : memref<1x8x32xf32, #tpu.memory_space<vmem>>, vector<1x8x32xf32>
      %111 = vector.shape_cast %110 : vector<1x8x32xf32> to vector<8x32xf32>
      %112 = vector.shape_cast %103 : vector<8x32xf32> to vector<1x8x32xf32>
      tpu.vector_store %arg15[%c0_51, %c0_52, %c0_53], %112 {strides = array<i32>} : memref<1x8x32xf32, #tpu.memory_space<vmem>>, vector<1x8x32xf32>,
    } else {
    }
    return
  }
  func.func @transform_0(%arg0: i32, %arg1: i32) -> (i32, i32, i32) {
    %c0_i32 = arith.constant 0 : i32
    %c0_i32_0 = arith.constant 0 : i32
    %c0_i32_1 = arith.constant 0 : i32
    return %arg0, %c0_i32, %c0_i32_0 : i32, i32, i32
  }
  func.func @transform_1(%arg0: i32, %arg1: i32) -> (i32, i32) {
    %c0_i32 = arith.constant 0 : i32
    %c0_i32_0 = arith.constant 0 : i32
    %c0_i32_1 = arith.constant 0 : i32
    return %c0_i32, %c0_i32_0 : i32, i32
  }
  func.func @transform_2(%arg0: i32, %arg1: i32) -> (i32, i32) {
    %c0_i32 = arith.constant 0 : i32
    %c0_i32_0 = arith.constant 0 : i32
    %c0_i32_1 = arith.constant 0 : i32
    return %c0_i32, %c0_i32_0 : i32, i32
  }
  func.func @transform_3(%arg0: i32, %arg1: i32) -> (i32, i32, i32) {
    %c0_i32 = arith.constant 0 : i32
    %c0_i32_0 = arith.constant 0 : i32
    %c0_i32_1 = arith.constant 0 : i32
    return %arg1, %c0_i32, %c0_i32_0 : i32, i32, i32
  }
  func.func @transform_4(%arg0: i32, %arg1: i32) -> (i32, i32, i32) {
    %c0_i32 = arith.constant 0 : i32
    %c0_i32_0 = arith.constant 0 : i32
    %c0_i32_1 = arith.constant 0 : i32
    return %arg1, %c0_i32, %c0_i32_0 : i32, i32, i32
  }
  func.func @transform_5(%arg0: i32, %arg1: i32) -> (i32, i32, i32) {
    %c0_i32 = arith.constant 0 : i32
    %c0_i32_0 = arith.constant 0 : i32
    %c0_i32_1 = arith.constant 0 : i32
    return %arg1, %c0_i32, %c0_i32_0 : i32, i32, i32
  }
  func.func @transform_6(%arg0: i32, %arg1: i32) -> (i32, i32) {
    %c0_i32 = arith.constant 0 : i32
    %c0_i32_0 = arith.constant 0 : i32
    %c0_i32_1 = arith.constant 0 : i32
    return %c0_i32, %c0_i32_0 : i32, i32
  }
  func.func @transform_7(%arg0: i32, %arg1: i32) -> (i32, i32) {
    %c0_i32 = arith.constant 0 : i32
    %c0_i32_0 = arith.constant 0 : i32
    %c0_i32_1 = arith.constant 0 : i32
    return %c0_i32, %c0_i32_0 : i32, i32
  }
  func.func @transform_8(%arg0: i32, %arg1: i32) -> (i32, i32) {
    %c0_i32 = arith.constant 0 : i32
    %c0_i32_0 = arith.constant 0 : i32
    %c0_i32_1 = arith.constant 0 : i32
    return %c0_i32, %c0_i32_0 : i32, i32
  }
  func.func @transform_9(%arg0: i32, %arg1: i32) -> (i32, i32) {
    %c0_i32 = arith.constant 0 : i32
    %c0_i32_0 = arith.constant 0 : i32
    %c0_i32_1 = arith.constant 0 : i32
    return %c0_i32, %c0_i32_0 : i32, i32
  }
  func.func @transform_10(%arg0: i32, %arg1: i32) -> (i32, i32) {
    %c0_i32 = arith.constant 0 : i32
    %c0_i32_0 = arith.constant 0 : i32
    %c0_i32_1 = arith.constant 0 : i32
    return %c0_i32, %c0_i32_0 : i32, i32
  }
  func.func @transform_11(%arg0: i32, %arg1: i32) -> (i32, i32) {
    %c0_i32 = arith.constant 0 : i32
    %c0_i32_0 = arith.constant 0 : i32
    %c0_i32_1 = arith.constant 0 : i32
    return %c0_i32, %c0_i32_0 : i32, i32
  }
  func.func @transform_12(%arg0: i32, %arg1: i32) -> (i32, i32, i32) {
    %c0_i32 = arith.constant 0 : i32
    %c0_i32_0 = arith.constant 0 : i32
    %c0_i32_1 = arith.constant 0 : i32
    return %arg0, %c0_i32, %c0_i32_0 : i32, i32, i32
  }
  func.func @transform_13(%arg0: i32, %arg1: i32) -> (i32, i32, i32) {
    %c0_i32 = arith.constant 0 : i32
    %c0_i32_0 = arith.constant 0 : i32
    %c0_i32_1 = arith.constant 0 : i32
    return %arg0, %c0_i32, %c0_i32_0 : i32, i32, i32
  }
}

module attributes {stable_mosaic.version = 11 : i64} {
  func.func @rmkv_kernel(%arg0: i32, %arg1: i32, %arg2: memref<1x16x32xf32, #tpu.memory_space<vmem>>, %arg3: memref<1x32xf32, #tpu.memory_space<vmem>>, %arg4: memref<1x32xf32, #tpu.memory_space<vmem>>, %arg5: memref<1x32x24xf32, #tpu.memory_space<vmem>>, %arg6: memref<1x1x24xf32, #tpu.memory_space<vmem>>, %arg7: memref<1x8x32xf32, #tpu.memory_space<vmem>>, %arg8: memref<1x32xf32, #tpu.memory_space<vmem>>, %arg9: memref<8x32xf32, #tpu.memory_space<vmem>>, %arg10: memref<32x96xf32, #tpu.memory_space<vmem>>, %arg11: memref<32x96xf32, #tpu.memory_space<vmem>>, %arg12: memref<1x96xf32, #tpu.memory_space<vmem>>, %arg13: memref<1x96xf32, #tpu.memory_space<vmem>>, %arg14: memref<1x8x32xf32, #tpu.memory_space<vmem>>, %arg15: memref<1x8x32xf32, #tpu.memory_space<vmem>>, %arg16: memref<16x32xf32, #tpu.memory_space<vmem>>, %arg17: memref<16x32xf32, #tpu.memory_space<vmem>>) attributes {dimension_semantics = [#tpu.dimension_semantics<parallel>, #tpu.dimension_semantics<arbitrary>], iteration_bounds = array<i64: 2, 4>, scalar_prefetch = 0 : i64, scratch_operands = 2 : i64, tpu.core_type = #tpu.core_type<tc>, window_params = [{transform_indices = @transform_0, window_bounds = array<i64: 1, 16, 32>}, {pipeline_mode = #tpu.pipeline_mode<synchronous>, transform_indices = @transform_1, window_bounds = array<i64: 1, 32>}, {pipeline_mode = #tpu.pipeline_mode<synchronous>, transform_indices = @transform_2, window_bounds = array<i64: 1, 32>}, {transform_indices = @transform_3, window_bounds = array<i64: 1, 32, 24>}, {transform_indices = @transform_4, window_bounds = array<i64: 1, 1, 24>}, {transform_indices = @transform_5, window_bounds = array<i64: 1, 8, 32>}, {pipeline_mode = #tpu.pipeline_mode<synchronous>, transform_indices = @transform_6, window_bounds = array<i64: 1, 32>}, {pipeline_mode = #tpu.pipeline_mode<synchronous>, transform_indices = @transform_7, window_bounds = array<i64: 8, 32>}, {pipeline_mode = #tpu.pipeline_mode<synchronous>, transform_indices = @transform_8, window_bounds = array<i64: 32, 96>}, {pipeline_mode = #tpu.pipeline_mode<synchronous>, transform_indices = @transform_9, window_bounds = array<i64: 32, 96>}, {pipeline_mode = #tpu.pipeline_mode<synchronous>, transform_indices = @transform_10, window_bounds = array<i64: 1, 96>}, {pipeline_mode = #tpu.pipeline_mode<synchronous>, transform_indices = @transform_11, window_bounds = array<i64: 1, 96>}, {transform_indices = @transform_12, window_bounds = array<i64: 1, 8, 32>}, {transform_indices = @transform_13, window_bounds = array<i64: 1, 8, 32>}]} {
    %c0_i32 = arith.constant 0 : i32
    %0 = arith.cmpi eq, %arg1, %c0_i32 : i32
    %1 = arith.extui %0 : i1 to i32
    %c0_i32_0 = arith.constant 0 : i32
    %2 = arith.cmpi ne, %1, %c0_i32_0 : i32
    scf.if %2 {
      %c0_23 = arith.constant 0 : index
      %c0_24 = arith.constant 0 : index
      %c0_25 = arith.constant 0 : index
      %49 = vector.load %arg2[%c0_23, %c0_24, %c0_25] : memref<1x16x32xf32, #tpu.memory_space<vmem>>, vector<1x16x32xf32>
      %50 = vector.shape_cast %49 : vector<1x16x32xf32> to vector<16x32xf32>
      %cst_26 = arith.constant dense<0.000000e+00> : vector<16xf32>
      %51 = vector.multi_reduction <add>, %50, %cst_26 [1] : vector<16x32xf32> to vector<16xf32>
      %52 = vector.shape_cast %51 : vector<16xf32> to vector<16x1xf32>
      %cst_27 = arith.constant 3.200000e+01 : f32
      %53 = vector.broadcast %cst_27 : f32 to vector<16x1xf32>
      %54 = arith.divf %52, %53 : vector<16x1xf32>
      %55 = vector.broadcast %54 : vector<16x1xf32> to vector<16x32xf32>
      %56 = arith.subf %50, %55 : vector<16x32xf32>
      %57 = arith.mulf %56, %56 : vector<16x32xf32>
      %cst_28 = arith.constant dense<0.000000e+00> : vector<16xf32>
      %58 = vector.multi_reduction <add>, %57, %cst_28 [1] : vector<16x32xf32> to vector<16xf32>
      %59 = vector.shape_cast %58 : vector<16xf32> to vector<16x1xf32>
      %cst_29 = arith.constant 3.200000e+01 : f32
      %60 = vector.broadcast %cst_29 : f32 to vector<16x1xf32>
      %61 = arith.divf %59, %60 : vector<16x1xf32>
      %62 = vector.broadcast %54 : vector<16x1xf32> to vector<16x32xf32>
      %63 = arith.subf %50, %62 : vector<16x32xf32>
      %cst_30 = arith.constant 9.99999974E-6 : f32
      %64 = vector.broadcast %cst_30 : f32 to vector<16x1xf32>
      %65 = arith.addf %61, %64 : vector<16x1xf32>
      %66 = math.rsqrt %65 : vector<16x1xf32>
      %67 = vector.broadcast %66 : vector<16x1xf32> to vector<16x32xf32>
      %68 = arith.mulf %63, %67 : vector<16x32xf32>
      %c0_31 = arith.constant 0 : index
      %c0_32 = arith.constant 0 : index
      %69 = vector.load %arg3[%c0_31, %c0_32] : memref<1x32xf32, #tpu.memory_space<vmem>>, vector<1x32xf32>
      %70 = vector.broadcast %69 : vector<1x32xf32> to vector<16x32xf32>
      %71 = arith.mulf %68, %70 : vector<16x32xf32>
      %c0_33 = arith.constant 0 : index
      %c0_34 = arith.constant 0 : index
      %72 = vector.load %arg4[%c0_33, %c0_34] : memref<1x32xf32, #tpu.memory_space<vmem>>, vector<1x32xf32>
      %73 = vector.broadcast %72 : vector<1x32xf32> to vector<16x32xf32>
      %74 = arith.addf %71, %73 : vector<16x32xf32>
      %c0_35 = arith.constant 0 : index
      %c0_36 = arith.constant 0 : index
      %75 = vector.load %arg16[%c0_35, %c0_36] : memref<16x32xf32, #tpu.memory_space<vmem>>, vector<16x32xf32>
      tpu.vector_store %arg16[%c0_35, %c0_36], %74 {strides = array<i32>} : memref<16x32xf32, #tpu.memory_space<vmem>>, vector<16x32xf32>,
      %cst_37 = arith.constant 0.000000e+00 : f32
      %76 = vector.broadcast %cst_37 : f32 to vector<16x32xf32>
      %c0_38 = arith.constant 0 : index
      %c0_39 = arith.constant 0 : index
      %77 = vector.load %arg17[%c0_38, %c0_39] : memref<16x32xf32, #tpu.memory_space<vmem>>, vector<16x32xf32>
      tpu.vector_store %arg17[%c0_38, %c0_39], %76 {strides = array<i32>} : memref<16x32xf32, #tpu.memory_space<vmem>>, vector<16x32xf32>,
    } else {
    }
    %c0 = arith.constant 0 : index
    %c0_1 = arith.constant 0 : index
    %3 = vector.load %arg16[%c0, %c0_1] : memref<16x32xf32, #tpu.memory_space<vmem>>, vector<16x32xf32>
    %c0_2 = arith.constant 0 : index
    %c0_3 = arith.constant 0 : index
    %c0_4 = arith.constant 0 : index
    %4 = vector.load %arg5[%c0_2, %c0_3, %c0_4] : memref<1x32x24xf32, #tpu.memory_space<vmem>>, vector<1x32x24xf32>
    %5 = vector.shape_cast %4 : vector<1x32x24xf32> to vector<32x24xf32>
    %cst = arith.constant dense<0.000000e+00> : vector<16x24xf32>
    %6 = tpu.matmul %3, %5, %cst {dimension_numbers = #tpu.dot_dimension_numbers<[1], [0], [0], [1], [0, 0, 1, 1], [], []>} : vector<16x32xf32>, vector<32x24xf32>, vector<16x24xf32> -> vector<16x24xf32>
    %c0_5 = arith.constant 0 : index
    %c0_6 = arith.constant 0 : index
    %c0_7 = arith.constant 0 : index
    %7 = vector.load %arg6[%c0_5, %c0_6, %c0_7] : memref<1x1x24xf32, #tpu.memory_space<vmem>>, vector<1x1x24xf32>
    %8 = vector.shape_cast %7 : vector<1x1x24xf32> to vector<1x24xf32>
    %9 = vector.broadcast %8 : vector<1x24xf32> to vector<16x24xf32>
    %10 = arith.addf %6, %9 : vector<16x24xf32>
    %11 = vector.extract_strided_slice %10 {offsets = [0, 0], sizes = [16, 8], strides = [1, 1]} : vector<16x24xf32> to vector<16x8xf32>
    %12 = vector.extract_strided_slice %10 {offsets = [0, 8], sizes = [16, 8], strides = [1, 1]} : vector<16x24xf32> to vector<16x8xf32>
    %13 = vector.extract_strided_slice %10 {offsets = [0, 16], sizes = [16, 8], strides = [1, 1]} : vector<16x24xf32> to vector<16x8xf32>
    %14 = tpu.iota {dimensions = array<i32: 0>} : vector<16x16xi32>
    %15 = tpu.iota {dimensions = array<i32: 1>} : vector<16x16xi32>
    %c8_i32 = arith.constant 8 : i32
    %16 = vector.broadcast %c8_i32 : i32 to vector<16x16xi32>
    %17 = arith.cmpi sge, %14, %16 : vector<16x16xi32>
    %18 = arith.cmpi sgt, %15, %14 : vector<16x16xi32>
    %19 = arith.andi %17, %18 : vector<16x16xi1>
    %c4_i32 = arith.constant 4 : i32
    %20 = vector.broadcast %c4_i32 : i32 to vector<16x16xi32>
    %21 = arith.cmpi sge, %15, %20 : vector<16x16xi32>
    %c8_i32_8 = arith.constant 8 : i32
    %22 = vector.broadcast %c8_i32_8 : i32 to vector<16x16xi32>
    %23 = arith.cmpi slt, %15, %22 : vector<16x16xi32>
    %24 = arith.andi %21, %23 : vector<16x16xi1>
    %25 = arith.ori %19, %24 : vector<16x16xi1>
    %cst_9 = arith.constant dense<0.000000e+00> : vector<16x16xf32>
    %26 = tpu.matmul %11, %12, %cst_9 {dimension_numbers = #tpu.dot_dimension_numbers<[1], [1], [0], [0], [0, 0, 1, 0], [], []>} : vector<16x8xf32>, vector<16x8xf32>, vector<16x16xf32> -> vector<16x16xf32>
    %cst_10 = arith.constant -1.000000e+09 : f32
    %27 = vector.broadcast %cst_10 : f32 to vector<16x16xf32>
    %28 = arith.select %25, %27, %26 : vector<16x16xi1>, vector<16x16xf32>
    %cst_11 = arith.constant dense<0xFF800000> : vector<16xf32>
    %29 = vector.multi_reduction <maximumf>, %28, %cst_11 [1] : vector<16x16xf32> to vector<16xf32>
    %30 = vector.shape_cast %29 : vector<16xf32> to vector<16x1xf32>
    %31 = vector.broadcast %30 : vector<16x1xf32> to vector<16x16xf32>
    %32 = arith.subf %28, %31 : vector<16x16xf32>
    %33 = math.exp %32 : vector<16x16xf32>
    %cst_12 = arith.constant dense<0.000000e+00> : vector<16xf32>
    %34 = vector.multi_reduction <add>, %33, %cst_12 [1] : vector<16x16xf32> to vector<16xf32>
    %35 = vector.shape_cast %34 : vector<16xf32> to vector<16x1xf32>
    %36 = tpu.reciprocal %35 {approx = true} : vector<16x1xf32> -> vector<16x1xf32>
    %37 = vector.broadcast %36 : vector<16x1xf32> to vector<16x16xf32>
    %38 = arith.mulf %33, %37 : vector<16x16xf32>
    %cst_13 = arith.constant dense<0.000000e+00> : vector<16x8xf32>
    %39 = tpu.matmul %38, %13, %cst_13 {dimension_numbers = #tpu.dot_dimension_numbers<[1], [0], [0], [1], [0, 0, 1, 1], [], []>} : vector<16x16xf32>, vector<16x8xf32>, vector<16x8xf32> -> vector<16x8xf32>
    %c0_14 = arith.constant 0 : index
    %c0_15 = arith.constant 0 : index
    %40 = vector.load %arg17[%c0_14, %c0_15] : memref<16x32xf32, #tpu.memory_space<vmem>>, vector<16x32xf32>
    %c0_16 = arith.constant 0 : index
    %c0_17 = arith.constant 0 : index
    %c0_18 = arith.constant 0 : index
    %41 = vector.load %arg7[%c0_16, %c0_17, %c0_18] : memref<1x8x32xf32, #tpu.memory_space<vmem>>, vector<1x8x32xf32>
    %42 = vector.shape_cast %41 : vector<1x8x32xf32> to vector<8x32xf32>
    %cst_19 = arith.constant dense<0.000000e+00> : vector<16x32xf32>
    %43 = tpu.matmul %39, %42, %cst_19 {dimension_numbers = #tpu.dot_dimension_numbers<[1], [0], [0], [1], [0, 0, 1, 1], [], []>} : vector<16x8xf32>, vector<8x32xf32>, vector<16x32xf32> -> vector<16x32xf32>
    %44 = arith.addf %40, %43 : vector<16x32xf32>
    %c0_20 = arith.constant 0 : index
    %c0_21 = arith.constant 0 : index
    %45 = vector.load %arg17[%c0_20, %c0_21] : memref<16x32xf32, #tpu.memory_space<vmem>>, vector<16x32xf32>
    tpu.vector_store %arg17[%c0_20, %c0_21], %44 {strides = array<i32>} : memref<16x32xf32, #tpu.memory_space<vmem>>, vector<16x32xf32>,
    %c3_i32 = arith.constant 3 : i32
    %46 = arith.cmpi eq, %arg1, %c3_i32 : i32
    %47 = arith.extui %46 : i1 to i32
    %c0_i32_22 = arith.constant 0 : i32
    %48 = arith.cmpi ne, %47, %c0_i32_22 : i32
    scf.if %48 {
      %c0_23 = arith.constant 0 : index
      %c0_24 = arith.constant 0 : index
      %49 = vector.load %arg17[%c0_23, %c0_24] : memref<16x32xf32, #tpu.memory_space<vmem>>, vector<16x32xf32>
      %c0_25 = arith.constant 0 : index
      %c0_26 = arith.constant 0 : index
      %50 = vector.load %arg8[%c0_25, %c0_26] : memref<1x32xf32, #tpu.memory_space<vmem>>, vector<1x32xf32>
      %51 = vector.broadcast %50 : vector<1x32xf32> to vector<16x32xf32>
      %52 = arith.addf %49, %51 : vector<16x32xf32>
      %53 = vector.extract_strided_slice %52 {offsets = [0, 0], sizes = [8, 32], strides = [1, 1]} : vector<16x32xf32> to vector<8x32xf32>
      %54 = vector.extract_strided_slice %52 {offsets = [8, 0], sizes = [8, 32], strides = [1, 1]} : vector<16x32xf32> to vector<8x32xf32>
      %c0_27 = arith.constant 0 : index
      %c0_28 = arith.constant 0 : index
      %55 = vector.load %arg9[%c0_27, %c0_28] : memref<8x32xf32, #tpu.memory_space<vmem>>, vector<8x32xf32>
      %cst_29 = arith.constant dense<0.000000e+00> : vector<8x8xf32>
      %56 = tpu.matmul %55, %54, %cst_29 {dimension_numbers = #tpu.dot_dimension_numbers<[1], [1], [0], [0], [0, 0, 1, 0], [], []>} : vector<8x32xf32>, vector<8x32xf32>, vector<8x8xf32> -> vector<8x8xf32>
      %cst_30 = arith.constant dense<0xFF800000> : vector<8xf32>
      %57 = vector.multi_reduction <maximumf>, %56, %cst_30 [1] : vector<8x8xf32> to vector<8xf32>
      %58 = vector.shape_cast %57 : vector<8xf32> to vector<8x1xf32>
      %59 = vector.broadcast %58 : vector<8x1xf32> to vector<8x8xf32>
      %60 = arith.subf %56, %59 : vector<8x8xf32>
      %61 = math.exp %60 : vector<8x8xf32>
      %cst_31 = arith.constant dense<0.000000e+00> : vector<8xf32>
      %62 = vector.multi_reduction <add>, %61, %cst_31 [1] : vector<8x8xf32> to vector<8xf32>
      %63 = vector.shape_cast %62 : vector<8xf32> to vector<8x1xf32>
      %64 = tpu.reciprocal %63 {approx = true} : vector<8x1xf32> -> vector<8x1xf32>
      %65 = vector.broadcast %64 : vector<8x1xf32> to vector<8x8xf32>
      %66 = arith.mulf %61, %65 : vector<8x8xf32>
      %cst_32 = arith.constant dense<0.000000e+00> : vector<8x32xf32>
      %67 = tpu.matmul %66, %54, %cst_32 {dimension_numbers = #tpu.dot_dimension_numbers<[1], [0], [0], [1], [0, 0, 1, 1], [], []>} : vector<8x8xf32>, vector<8x32xf32>, vector<8x32xf32> -> vector<8x32xf32>
      %c0_33 = arith.constant 0 : index
      %c0_34 = arith.constant 0 : index
      %68 = vector.load %arg10[%c0_33, %c0_34] : memref<32x96xf32, #tpu.memory_space<vmem>>, vector<32x96xf32>
      %cst_35 = arith.constant dense<0.000000e+00> : vector<8x96xf32>
      %69 = tpu.matmul %67, %68, %cst_35 {dimension_numbers = #tpu.dot_dimension_numbers<[1], [0], [0], [1], [0, 0, 1, 1], [], []>} : vector<8x32xf32>, vector<32x96xf32>, vector<8x96xf32> -> vector<8x96xf32>
      %c0_36 = arith.constant 0 : index
      %c0_37 = arith.constant 0 : index
      %70 = vector.load %arg12[%c0_36, %c0_37] : memref<1x96xf32, #tpu.memory_space<vmem>>, vector<1x96xf32>
      %71 = vector.broadcast %70 : vector<1x96xf32> to vector<8x96xf32>
      %72 = arith.addf %69, %71 : vector<8x96xf32>
      %c0_38 = arith.constant 0 : index
      %c0_39 = arith.constant 0 : index
      %73 = vector.load %arg11[%c0_38, %c0_39] : memref<32x96xf32, #tpu.memory_space<vmem>>, vector<32x96xf32>
      %cst_40 = arith.constant dense<0.000000e+00> : vector<8x96xf32>
      %74 = tpu.matmul %53, %73, %cst_40 {dimension_numbers = #tpu.dot_dimension_numbers<[1], [0], [0], [1], [0, 0, 1, 1], [], []>} : vector<8x32xf32>, vector<32x96xf32>, vector<8x96xf32> -> vector<8x96xf32>
      %c0_41 = arith.constant 0 : index
      %c0_42 = arith.constant 0 : index
      %75 = vector.load %arg13[%c0_41, %c0_42] : memref<1x96xf32, #tpu.memory_space<vmem>>, vector<1x96xf32>
      %76 = vector.broadcast %75 : vector<1x96xf32> to vector<8x96xf32>
      %77 = arith.addf %74, %76 : vector<8x96xf32>
      %78 = vector.extract_strided_slice %72 {offsets = [0, 0], sizes = [8, 32], strides = [1, 1]} : vector<8x96xf32> to vector<8x32xf32>
      %79 = vector.extract_strided_slice %77 {offsets = [0, 0], sizes = [8, 32], strides = [1, 1]} : vector<8x96xf32> to vector<8x32xf32>
      %80 = arith.addf %78, %79 : vector<8x32xf32>
      %81 = arith.negf %80 : vector<8x32xf32>
      %82 = math.exp %81 : vector<8x32xf32>
      %cst_43 = arith.constant 1.000000e+00 : f32
      %83 = vector.broadcast %cst_43 : f32 to vector<8x32xf32>
      %84 = arith.addf %83, %82 : vector<8x32xf32>
      %85 = arith.divf %83, %84 : vector<8x32xf32>
      %86 = vector.extract_strided_slice %72 {offsets = [0, 32], sizes = [8, 32], strides = [1, 1]} : vector<8x96xf32> to vector<8x32xf32>
      %87 = vector.extract_strided_slice %77 {offsets = [0, 32], sizes = [8, 32], strides = [1, 1]} : vector<8x96xf32> to vector<8x32xf32>
      %88 = arith.addf %86, %87 : vector<8x32xf32>
      %89 = arith.negf %88 : vector<8x32xf32>
      %90 = math.exp %89 : vector<8x32xf32>
      %cst_44 = arith.constant 1.000000e+00 : f32
      %91 = vector.broadcast %cst_44 : f32 to vector<8x32xf32>
      %92 = arith.addf %91, %90 : vector<8x32xf32>
      %93 = arith.divf %91, %92 : vector<8x32xf32>
      %94 = vector.extract_strided_slice %72 {offsets = [0, 64], sizes = [8, 32], strides = [1, 1]} : vector<8x96xf32> to vector<8x32xf32>
      %95 = vector.extract_strided_slice %77 {offsets = [0, 64], sizes = [8, 32], strides = [1, 1]} : vector<8x96xf32> to vector<8x32xf32>
      %96 = arith.mulf %85, %95 : vector<8x32xf32>
      %97 = arith.addf %94, %96 : vector<8x32xf32>
      %98 = math.tanh %97 : vector<8x32xf32>
      %cst_45 = arith.constant 1.000000e+00 : f32
      %99 = vector.broadcast %cst_45 : f32 to vector<8x32xf32>
      %100 = arith.subf %99, %93 : vector<8x32xf32>
      %101 = arith.mulf %100, %98 : vector<8x32xf32>
      %102 = arith.mulf %93, %53 : vector<8x32xf32>
      %103 = arith.addf %101, %102 : vector<8x32xf32>
      %c0_46 = arith.constant 0 : index
      %c8 = arith.constant 8 : index
      %c0_47 = arith.constant 0 : index
      %104 = vector.load %arg2[%c0_46, %c8, %c0_47] : memref<1x16x32xf32, #tpu.memory_space<vmem>>, vector<1x8x32xf32>
      %105 = vector.shape_cast %104 : vector<1x8x32xf32> to vector<8x32xf32>
      %106 = arith.addf %54, %105 : vector<8x32xf32>
      %c0_48 = arith.constant 0 : index
      %c0_49 = arith.constant 0 : index
      %c0_50 = arith.constant 0 : index
      %107 = vector.load %arg14[%c0_48, %c0_49, %c0_50] : memref<1x8x32xf32, #tpu.memory_space<vmem>>, vector<1x8x32xf32>
      %108 = vector.shape_cast %107 : vector<1x8x32xf32> to vector<8x32xf32>
      %109 = vector.shape_cast %106 : vector<8x32xf32> to vector<1x8x32xf32>
      tpu.vector_store %arg14[%c0_48, %c0_49, %c0_50], %109 {strides = array<i32>} : memref<1x8x32xf32, #tpu.memory_space<vmem>>, vector<1x8x32xf32>,
      %c0_51 = arith.constant 0 : index
      %c0_52 = arith.constant 0 : index
      %c0_53 = arith.constant 0 : index
      %110 = vector.load %arg15[%c0_51, %c0_52, %c0_53] : memref<1x8x32xf32, #tpu.memory_space<vmem>>, vector<1x8x32xf32>
      %111 = vector.shape_cast %110 : vector<1x8x32xf32> to vector<8x32xf32>
      %112 = vector.shape_cast %103 : vector<8x32xf32> to vector<1x8x32xf32>
      tpu.vector_store %arg15[%c0_51, %c0_52, %c0_53], %112 {strides = array<i32>} : memref<1x8x32xf32, #tpu.memory_space<vmem>>, vector<1x8x32xf32>,
    } else {
    }
    return
  }
  func.func @transform_0(%arg0: i32, %arg1: i32) -> (i32, i32, i32) {
    %c0_i32 = arith.constant 0 : i32
    %c0_i32_0 = arith.constant 0 : i32
    %c0_i32_1 = arith.constant 0 : i32
    return %arg0, %c0_i32, %c0_i32_0 : i32, i32, i32
  }
  func.func @transform_1(%arg0: i32, %arg1: i32) -> (i32, i32) {
    %c0_i32 = arith.constant 0 : i32
    %c0_i32_0 = arith.constant 0 : i32
    %c0_i32_1 = arith.constant 0 : i32
    return %c0_i32, %c0_i32_0 : i32, i32
  }
  func.func @transform_2(%arg0: i32, %arg1: i32) -> (i32, i32) {
    %c0_i32 = arith.constant 0 : i32
    %c0_i32_0 = arith.constant 0 : i32
    %c0_i32_1 = arith.constant 0 : i32
    return %c0_i32, %c0_i32_0 : i32, i32
  }
  func.func @transform_3(%arg0: i32, %arg1: i32) -> (i32, i32, i32) {
    %c0_i32 = arith.constant 0 : i32
    %c0_i32_0 = arith.constant 0 : i32
    %c0_i32_1 = arith.constant 0 : i32
    return %arg1, %c0_i32, %c0_i32_0 : i32, i32, i32
  }
  func.func @transform_4(%arg0: i32, %arg1: i32) -> (i32, i32, i32) {
    %c0_i32 = arith.constant 0 : i32
    %c0_i32_0 = arith.constant 0 : i32
    %c0_i32_1 = arith.constant 0 : i32
    return %arg1, %c0_i32, %c0_i32_0 : i32, i32, i32
  }
  func.func @transform_5(%arg0: i32, %arg1: i32) -> (i32, i32, i32) {
    %c0_i32 = arith.constant 0 : i32
    %c0_i32_0 = arith.constant 0 : i32
    %c0_i32_1 = arith.constant 0 : i32
    return %arg1, %c0_i32, %c0_i32_0 : i32, i32, i32
  }
  func.func @transform_6(%arg0: i32, %arg1: i32) -> (i32, i32) {
    %c0_i32 = arith.constant 0 : i32
    %c0_i32_0 = arith.constant 0 : i32
    %c0_i32_1 = arith.constant 0 : i32
    return %c0_i32, %c0_i32_0 : i32, i32
  }
  func.func @transform_7(%arg0: i32, %arg1: i32) -> (i32, i32) {
    %c0_i32 = arith.constant 0 : i32
    %c0_i32_0 = arith.constant 0 : i32
    %c0_i32_1 = arith.constant 0 : i32
    return %c0_i32, %c0_i32_0 : i32, i32
  }
  func.func @transform_8(%arg0: i32, %arg1: i32) -> (i32, i32) {
    %c0_i32 = arith.constant 0 : i32
    %c0_i32_0 = arith.constant 0 : i32
    %c0_i32_1 = arith.constant 0 : i32
    return %c0_i32, %c0_i32_0 : i32, i32
  }
  func.func @transform_9(%arg0: i32, %arg1: i32) -> (i32, i32) {
    %c0_i32 = arith.constant 0 : i32
    %c0_i32_0 = arith.constant 0 : i32
    %c0_i32_1 = arith.constant 0 : i32
    return %c0_i32, %c0_i32_0 : i32, i32
  }
  func.func @transform_10(%arg0: i32, %arg1: i32) -> (i32, i32) {
    %c0_i32 = arith.constant 0 : i32
    %c0_i32_0 = arith.constant 0 : i32
    %c0_i32_1 = arith.constant 0 : i32
    return %c0_i32, %c0_i32_0 : i32, i32
  }
  func.func @transform_11(%arg0: i32, %arg1: i32) -> (i32, i32) {
    %c0_i32 = arith.constant 0 : i32
    %c0_i32_0 = arith.constant 0 : i32
    %c0_i32_1 = arith.constant 0 : i32
    return %c0_i32, %c0_i32_0 : i32, i32
  }
  func.func @transform_12(%arg0: i32, %arg1: i32) -> (i32, i32, i32) {
    %c0_i32 = arith.constant 0 : i32
    %c0_i32_0 = arith.constant 0 : i32
    %c0_i32_1 = arith.constant 0 : i32
    return %arg0, %c0_i32, %c0_i32_0 : i32, i32, i32
  }
  func.func @transform_13(%arg0: i32, %arg1: i32) -> (i32, i32, i32) {
    %c0_i32 = arith.constant 0 : i32
    %c0_i32_0 = arith.constant 0 : i32
    %c0_i32_1 = arith.constant 0 : i32
    return %arg0, %c0_i32, %c0_i32_0 : i32, i32, i32
  }
}

</mosaic_0001>

<bundles_post_ra>
// kernel: tpu_custom_call.1
= control target key start
LH: loop header
LB: loop body
LE: loop exit
PB: predicated region body
PF: predicated region fallthrough
CT: control target
= control target key end

     0   :  { %s2292_s0 = inlined_call_operand.vmem [shape: f32[2,16,32], index: 0, kind: input, shape index: {}]   ;;  %s2293_s1 = inlined_call_operand.vmem [shape: f32[1,32], index: 1, kind: input, shape index: {}]   ;;  %s2294_s2 = inlined_call_operand.vmem [shape: f32[1,32], index: 2, kind: input, shape index: {}]   ;;  %s2295_s3 = inlined_call_operand.vmem [shape: f32[4,32,24], index: 3, kind: input, shape index: {}]   ;;  %s2296_s4 = inlined_call_operand.vmem [shape: f32[4,1,24], index: 4, kind: input, shape index: {}]   ;;  %s2297_s5 = inlined_call_operand.vmem [shape: f32[4,8,32], index: 5, kind: input, shape index: {}]   ;;  %s2298_s6 = inlined_call_operand.vmem [shape: f32[1,32], index: 6, kind: input, shape index: {}]   ;;  %s2299_s7 = inlined_call_operand.vmem [shape: f32[8,32], index: 7, kind: input, shape index: {}]   ;;  %s2300_s8 = inlined_call_operand.vmem [shape: f32[32,96], index: 8, kind: input, shape index: {}]   ;;  %s2301_s9 = inlined_call_operand.vmem [shape: f32[32,96], index: 9, kind: input, shape index: {}]   ;;  %s2302_s10 = inlined_call_operand.vmem [shape: f32[1,96], index: 10, kind: input, shape index: {}]   ;;  %s2303_s11 = inlined_call_operand.vmem [shape: f32[1,96], index: 11, kind: input, shape index: {}]   ;;  %s2304_s12 = inlined_call_operand.hbm [shape: f32[2,8,32], index: 12, kind: output, shape index: {0}]   ;;  %s2305_s13 = inlined_call_operand.hbm [shape: f32[2,8,32], index: 13, kind: output, shape index: {1}]  }
   0x1   :  { %2323 = sst [smem:[#allocation23_spill]] %s2304_s12 }
   0x2   :  { %2324 = sst [smem:[#allocation24_spill]] %s2305_s13 }
   0x3   :  { %19 = vsyncpa [#allocation5], 0 }
   0x4   :  { %21 = vsyncpa [#allocation5 + $0x1], 0 }
   0x5   :  { %22 = vsyncpa [#allocation7], 0 }
   0x6   :  { %24 = vsyncpa [#allocation7 + $0x1], 0  ;;  %s2011_s25 = smov 0   ;;  %s2013_s26 = smov 0  }
   0x7   :  { %s2015_s27 = smov 0   ;;  %s2017_s28 = smov 0  }
   0x8   :  { %s2019_s29 = smov 0   ;;  %s2021_s30 = smov 0  }
   0x9   :  { %s2023_s14 = smov 0   ;;  %s2025_s15 = smov 0  }
   0xa LB: > { %2325 = sst [smem:[#allocation10_spill]] %s1900_s25  ;;  %s1518_s16 = sadd.s32 4294967295, %s1928_s15   ;;  %s1928_s15 = sphi %s2025_s15, %s30_s15   ;;  %s1924_s14 = sphi %s2023_s14, %s2354_s14   ;;  %s1920_s30 = sphi %s2021_s30, %s2353_s30   ;;  %s1916_s29 = sphi %s2019_s29, %s2352_s29   ;;  %s1912_s28 = sphi %s2017_s28, %s2351_s28   ;;  %s1908_s27 = sphi %s2015_s27, %s2350_s27   ;;  %s1904_s26 = sphi %s2013_s26, %s2349_s26   ;;  %s1900_s25 = sphi %s2011_s25, %s2348_s25  }
   0xb   : > { %2326 = sst [smem:[#allocation11_spill]] %s1904_s26  ;;  %s1519_s17 = sadd.s32 4294967294, %s1928_s15  }
   0xc   : > { %2327 = sst [smem:[#allocation12_spill]] %s1908_s27  ;;  %s39_s18 = sadd.s32 1, %s1920_s30 }
   0xd   : > { %2328 = sst [smem:[#allocation13_spill]] %s1916_s29  ;;  %p40_p0 = scmp.ge.s32.totalorder %s39_s18, 4 }
   0xe   : > { %2329 = sst [smem:[#allocation14_spill]] %s1920_s30  ;;  %s42_s19 = sadd.s32 1, %s1924_s14 }
   0xf   : > { %2330 = sst [smem:[#allocation15_spill]] %s1924_s14  ;;  %p331_p1 = scmp.ne.s32.totalorder %s1908_s27, %s1904_s26 }
  0x10   : > { %2331 = sst [smem:[#allocation16_spill]] %s1928_s15  ;;  %p332_p2 = scmp.eq.s32.totalorder %s1518_s16, 7 }
  0x11   : > { %s2356_s18 = smov (%p40_p0, %s39_s18), 0  ;;  %s2358_s19 = smov (!%p40_p0, %s42_s19), %s1924_s14 }
  0x12   : > { %2332 = sst [smem:[#allocation17_spill]] %s2356_s18  ;;  %p2060_p3 = por %p332_p2, %p331_p1 }
  0x13   : > { %p337_p4 = scmp.ne.s32.totalorder %s1904_s26, %s1900_s25  ;;  %p44_p5 = scmp.ge.s32.totalorder %s2358_s19, 2 }
  0x14   : > { %s2333_s20 = scalar_select %p2060_p3, 1, 0 }
  0x15   : > { %p338_p6 = scmp.eq.s32.totalorder %s1519_s17, 7  ;;  %p1522_p7 = scmp.ge.s32.totalorder %s1928_s15, 1 }
  0x16   : > { %2334 = sst [smem:[#allocation18_spill]] %s2333_s20  ;;  %p435_p8 = scmp.lt.s32.totalorder %s1928_s15, 9 }
  0x17   : > { %s2360_s19 = smov (%p44_p5, %s2358_s19), 0  ;;  %p2070_p9 = por %p338_p6, %p337_p4 }
  0x18   : > { %2335 = sst [smem:[#allocation19_spill]] %s2360_s19  ;;  %p436_p10 = pnand %p1522_p7, %p435_p8 }
  0x19   : > { %s2336_s21 = scalar_select %p2070_p9, 1, 0 }
  0x1a   : > { %s318_s22 = ssub.s32 %s1924_s14, %s2360_s19  ;;  %s321_s23 = sadd.s32 1, %s1908_s27 }
  0x1b   : > { %2337 = sst [smem:[#allocation20_spill]] %s2336_s21  ;;  %p319_p11 = scmp.eq.s32.totalorder %s318_s22, 0 }
  0x1c   : > { %439 = sbr.rel (%p436_p10) target bundleno = 3085 (0xc0d), region = 68 }
  0x1d   : > { %s2078_s24 = scalar_select %p319_p11, %s1908_s27, %s321_s23  }
  0x1f   : > { %2338 = sst [smem:[#allocation21_spill]] %s2078_s24 }
  0x23   : > { %s2081_s16 = sand.u32 1, %s1904_s26   ;;  %p496_p12 = scmp.lt.s32.totalorder %s1916_s29, 1 }
  0x24   : > { %2339 = sst [smem:[#allocation22_spill]] %s2081_s16  ;;  %s1523_s17 = sshll.u32 %s2081_s16, 3 }
  0x25   : > { %p501_p13 = scmp.lt.s32.totalorder %s1912_s28, 3  ;;  %s2113_s19 = scalar_lea.vmem [#allocation6], %s1523_s17 }
  0x26   : > { %s497_s18 = scalar_select %p496_p12, %s1916_s29, 1 }
  0x27   : > { %s2088_s30 = scalar_select %p501_p13, %s1912_s28, 3 }
  0x28   : > { %s1560_s22 = sshll.u32 %s497_s18, 4  ;;  %s2111_s29 = scalar_lea.vmem [#allocation4], %s1523_s17 }
  0x29   : > { %s2093_s14 = scalar_lea.vmem %s2292_s0, %s1560_s22  ;;  %s1561_s24 = sshll.u32 %s2088_s30, 5 }
  0x2a   : > { %s2099_s21 = scalar_lea.vmem %s2295_s3, %s1561_s24  ;;  %s508_s13 = scalar_lea.vmem %s2296_s4, %s2088_s30 }
  0x2b   : > { %s1529_s12 = sshll.u32 %s2088_s30, 3  ;;  %p1530_p0 = scmp.ne.s32.totalorder %s1912_s28, 0 }
  0x2c   : > { %s2109_s18 = scalar_lea.vmem %s2297_s5, %s1529_s12  ;;  %v517_v0 = vld [vmem:[%s2093_s14] sm:$0xff] (!%p1530_p0)  ;;  %vm519_vm0 = vcmask (!%p1530_p0), 261120   ;;  %v518_v1 = vld [vmem:[%s2093_s14 + $0x8] sm:$0xff] (!%p1530_p0)  ;;  %v1930_v3 = vmov (!%p1530_p0), 0.0  }
  0x2d   : > { %516 = sbr.rel (%p1530_p0) target bundleno = 363 (0x16b), region = 72  ;;  %v520_v2 = vsel (!%p1530_p0), %vm519_vm0, %v517_v0, 0.0  ;;  %567 = vst.msk [vmem:[#allocation3] sm:$0xff] (!%p1530_p0), %vm519_vm0, %v1930_v3  ;;  %568 = vst.msk [vmem:[#allocation3 + $0x8] sm:$0xff] (!%p1530_p0), %vm519_vm0, %v1930_v3  ;;  %v523_v4 = vsel (!%p1530_p0), %vm519_vm0, %v518_v1, 0.0 }
  0x2e   : > { %521 = vadd.xlane.f32.xlu0 (!%p1530_p0), %v520_v2  ;;  %v1531_v22 = vld [vmem:[%s2293_s1] ss:$0 sm:$0xff] (!%p1530_p0) }
  0x2f   : > { %v1532_v24 = vld [vmem:[%s2294_s2] ss:$0 sm:$0xff] (!%p1530_p0) }
  0x32   : > { %524 = vadd.xlane.f32.xlu0 (!%p1530_p0), %v523_v4 }
  0xbb   : > { %v522_v5 = vpop.xlane.xlu0 %521 }
  0xbc   : > { %v527_v6 = vmul.f32 0.03125, %v522_v5 }
  0xbe   : > { %v529_v7 = vsub.f32 %v517_v0, %v527_v6 }
  0xbf   : > { %v525_v8 = vpop.xlane.xlu0 %524 }
  0xc0   : > { %v528_v9 = vmul.f32 0.03125, %v525_v8  ;;  %v531_v10 = vmul.f32 %v529_v7, %v529_v7 }
  0xc2   : > { %v530_v11 = vsub.f32 %v518_v1, %v528_v9  ;;  %v533_v12 = vsel %vm519_vm0, %v531_v10, 0.0 }
  0xc3   : > { %534 = vadd.xlane.f32.xlu1 %v533_v12 }
  0xc4   : > { %v532_v13 = vmul.f32 %v530_v11, %v530_v11 }
  0xc6   : > { %v536_v14 = vsel %vm519_vm0, %v532_v13, 0.0 }
  0xc7   : > { %537 = vadd.xlane.f32.xlu1 %v536_v14 }
 0x150   : > { %v535_v15 = vpop.xlane.xlu1 %534 }
 0x151   : > { %v539_v16 = vmul.f32 0.03125, %v535_v15 }
 0x153   : > { %v541_v17 = vadd.f32 1e-05, %v539_v16 }
 0x154   : > { %v538_v18 = vpop.xlane.xlu1 %537 }
 0x155   : > { %1770 = vrsqrt.f32 %v541_v17  ;;  %v540_v19 = vmul.f32 0.03125, %v538_v18 }
 0x157   : > { %v542_v20 = vadd.f32 1e-05, %v540_v19 }
 0x159   : > { %1772 = vrsqrt.f32 %v542_v20 }
 0x15f   : > { %v1771_v21 = vpop.eup %1770 }
 0x160   : > { %v545_v23 = vmul.f32 %v1771_v21, %v529_v7 }
 0x162   : > { %v554_v25 = vmul.f32 %v1531_v22, %v545_v23 }
 0x163   : > { %v1773_v26 = vpop.eup %1772 }
 0x164   : > { %v563_v27 = vadd.f32 %v1532_v24, %v554_v25  ;;  %v546_v28 = vmul.f32 %v1773_v26, %v530_v11 }
 0x166   : > { %565 = vst.msk [vmem:[#allocation2] sm:$0xff] %vm519_vm0, %v563_v27  ;;  %v555_v29 = vmul.f32 %v1531_v22, %v546_v28 }
 0x168   : > { %v564_v30 = vadd.f32 %v1532_v24, %v555_v29 }
 0x16a   : > { %566 = vst.msk [vmem:[#allocation2 + $0x8] sm:$0xff] %vm519_vm0, %v564_v30 }
 0x16b PF: > { %v571_v31 = vld [vmem:[%s2099_s21] sm:$0xff]  ;;  %v572_v32 = vld [vmem:[%s2099_s21 + $0x8] sm:$0xff]  ;;  %v573_v33 = vld [vmem:[%s2099_s21 + $0x10] sm:$0xff]  ;;  %vm582_vm1 = vcmask 261120   ;;  %vm686_vm2 = vcmask 64512   ;;  %v664_v49 = vlaneseq  ;;  %vm772_vm9 = vcmask 130048  }
 0x16c   : > { %v1655_v34 = vpack.c.bf16 %v572_v32, %v571_v31  ;;  %v574_v35 = vld [vmem:[%s2099_s21 + $0x18] sm:$0xff]  ;;  %v1533_v39 = vld [vmem:[%s508_s13] ss:$0 sm:$0xff]  ;;  %s1931_s21 = smov 120   ;;  %vm1664_vm3 = vmpackc.low %vm686_vm2, %vm686_vm2  ;;  %s1932_s13 = smov 112  }
 0x16d   : > { %v569_v36 = vld [vmem:[#allocation2] sm:$0xff]  ;;  %v1659_v37 = vpack.c.bf16 %v574_v35, %v573_v33  ;;  %v665_v50 = vshrl.u32 %v664_v49, 7  ;;  %v668_v51 = vand.u32 127, %v664_v49  ;;  %v883_v18 = vld [vmem:[#allocation3 + $0x8] sm:$0xff]  ;;  %v882_v19 = vld [vmem:[#allocation3] sm:$0xff]  ;;  %p1544_p1 = scmp.ne.s32.totalorder %s1912_s28, 3 }
 0x16e   : > { %1601 = vmatprep.mubr.msk.f32.mxu0 %vm582_vm1, %v569_v36  ;;  %1656 = vmatprep.subr.bf16.mxu0 %v1655_v34  ;;  %v884_v5 = vld [vmem:[%s2109_s18] sm:$0xff]  ;;  %v1933_v26 = vmov (!%p1544_p1), 0.0   ;;  %v1343_v28 = vld [vmem:[%s2093_s14 + $0x8] sm:$0xff] (!%p1544_p1)  ;;  %vm1934_vm10 = vmmov (!%p1544_p1), 0   ;;  %s1936_s17 = smov (!%p1544_p1), 64   ;;  %s1937_s18 = smov (!%p1544_p1), 32  }
 0x16f   : > { %1658 = vmatpush3.bf16.msra.mxu0 %v1655_v34  ;;  %v666_v52 = vadd.s32 8, %v665_v50  ;;  %vm675_vm4 = vcmp.ge.s32.totalorder %v668_v51, 4  ;;  %vm676_vm5 = vcmp.lt.s32.totalorder %v668_v51, 8  ;;  %v1545_v25 = vld [vmem:[%s2298_s6] ss:$0 sm:$0xff] (!%p1544_p1)  ;;  %v1147_v50 = vld [vmem:[%s2300_s8 + $0x8] sm:$0xff] (!%p1544_p1) }
 0x170   : > { %1660 = vmatprep.subr.bf16.mxu0 %v1659_v37  ;;  %vm677_vm7 = vmand %vm675_vm4, %vm676_vm5  ;;  %v985_v30 = vld [vmem:[%s2299_s7] sm:$0xff] (!%p1544_p1)  ;;  %s1938_s12 = smov (!%p1544_p1), 96  }
 0x171   : > { %v570_v38 = vld [vmem:[#allocation2 + $0x8] sm:$0xff]  ;;  %vm672_vm6 = vcmp.gt.s32.totalorder %v668_v51, %v666_v52  ;;  %v1146_v49 = vld [vmem:[%s2300_s8] sm:$0xff] (!%p1544_p1) }
 0x172   : > { %vm679_vm8 = vmor %vm672_vm6, %vm677_vm7  ;;  %v1674_v52 = vpack.c.bf16 (!%p1544_p1), %v1147_v50, %v1146_v49 }
 0x173   : > { %1662 = vmatpush3.bf16.msra.mxu0 %v1659_v37 }
 0x176   : > { %1602 = vmatmul.mubr.msk.f32.vlgmr.msra.gmra.mrb[0].mxu0 %vm582_vm1, %v570_v38 }
 0x249   : > { %v1603_v40 = vpop.f32.mrb[0].mxu0 }
 0x24a   : > { %v661_v41 = vadd.f32 %v1603_v40, %v1533_v39  ;;  %v655_v42 = vpop.f32.mrb[1].mxu0  ;;  %v1231_v40 = vld [vmem:[%s2301_s9 + $0x8] sm:$0xff] (!%p1544_p1) }
 0x24b   : > { %v656_v43 = vadd.f32 %v1533_v39, %v655_v42  ;;  %v1230_v39 = vld [vmem:[%s2301_s9] sm:$0xff] (!%p1544_p1)  ;;  %v1935_v42 = vmov (!%p1544_p1), 0.0|0.0  }
 0x24d   : > { %1608 = vmatprep.mubr.msk.f32.mxu1 %vm686_vm2, %v656_v43  ;;  %v1774_v44 = vpack.i.bf16 %v661_v41, %v656_v43  ;;  %v1680_v43 = vpack.c.bf16 (!%p1544_p1), %v1231_v40, %v1230_v39 }
 0x24f   : > { %1775 = vrot.lane.b32.xlu0 %v1774_v44, %s1931_s21 }
 0x2c1   : > { %v1776_v45 = vpop.permute.xlu0 %1775 }
 0x2c2   : > { %v1778_v46 = vunpack.i.h.bf16 %v1776_v45  ;;  %v1777_v47 = vunpack.i.l.bf16 %v1776_v45 }
 0x2c4   : > { %v1663_v48 = vpack.c.bf16 %v1778_v46, %v1777_v47 }
 0x2c6   : > { %1665 = vmatprep.subr.msk.bf16.mxu1 %vm1664_vm3, %v1663_v48 }
 0x2c7   : > { %1668 = vmatpush3.bf16.xpose.msk.msra.mxu1 %vm1664_vm3, %v1663_v48 }
 0x2c8   : > { %1618 = vmatprep.subr.mxu1 %v884_v5 }
 0x2ce   : > { %1609 = vmatmul.mubr.msk.f32.vlgmr.msra.gmra.mrb[0].mxu1 %vm686_vm2, %v661_v41  ;;  %v1232_v41 = vld [vmem:[%s2301_s9 + $0x10] sm:$0xff] (!%p1544_p1) }
 0x2cf   : > { %1619 = vmatpush3.msra.mxu1 %v884_v5 }
 0x2d0   : > { %1628 = vmatprep.subr.mxu1 (!%p1544_p1), %v1933_v26 }
 0x3a1   : > { %v1610_v53 = vpop.f32.mrb[0].mxu1 }
 0x3a2   : > { %v771_v54 = vsel %vm679_vm8, -1e+09, %v1610_v53  ;;  %v761_v55 = vpop.f32.mrb[1].mxu1 }
 0x3a3   : > { %v770_v56 = vsel %vm677_vm7, -1e+09, %v761_v55  ;;  %v776_v57 = vsel %vm772_vm9, %v771_v54, -inf  ;;  %v1149_v55 = vld [vmem:[%s2300_s8 + $0x18] sm:$0xff] (!%p1544_p1) }
 0x3a4   : > { %777 = vmax.xlane.f32.xlu1 %v776_v57  ;;  %v773_v58 = vsel %vm772_vm9, %v770_v56, -inf  ;;  %v1551_v57 = vld [vmem:[%s2303_s11] ss:$0 sm:$0xff] (!%p1544_p1) }
 0x3a5   : > { %774 = vmax.xlane.f32.xlu0 %v773_v58 }
 0x431   : > { %v778_v59 = vpop.xlane.xlu1 %777 }
 0x432   : > { %v780_v60 = vsub.f32 %v771_v54, %v778_v59  ;;  %v775_v61 = vpop.xlane.xlu0 %774  ;;  %v1148_v54 = vld [vmem:[%s2300_s8 + $0x10] sm:$0xff] (!%p1544_p1) }
 0x433   : > { %v779_v62 = vsub.f32 %v770_v56, %v775_v61  ;;  %v1677_v56 = vpack.c.bf16 (!%p1544_p1), %v1149_v55, %v1148_v54 }
 0x434   : > { %v783_v63 = vmul.f32 1.442695, %v780_v60 }
 0x435   : > { %v781_v0 = vmul.f32 1.442695, %v779_v62 }
 0x436   : > { %1784 = vpow2.f32 %v783_v63  ;;  %v1549_v63 = vld [vmem:[%s2302_s10] ss:$0 sm:$0xff] (!%p1544_p1) }
 0x437   : > { %1786 = vpow2.f32 %v781_v0 }
 0x440   : > { %v1785_v1 = vpop.eup %1784 }
 0x441   : > { %v788_v2 = vsel %vm772_vm9, %v1785_v1, 0.0  ;;  %v1787_v3 = vpop.eup %1786 }
 0x442   : > { %789 = vadd.xlane.f32.xlu1 %v788_v2  ;;  %v785_v4 = vsel %vm772_vm9, %v1787_v3, 0.0 }
 0x446   : > { %786 = vadd.xlane.f32.xlu1 %v785_v4 }
 0x457   : > { %1780 = vrot.lane.b32.xlu1 %v1774_v44, %s1932_s13  ;;  %v1233_v44 = vld [vmem:[%s2301_s9 + $0x18] sm:$0xff] (!%p1544_p1) }
 0x458   : > { %v1683_v46 = vpack.c.bf16 (!%p1544_p1), %v1233_v44, %v1232_v41 }
 0x4cf   : > { %v790_v6 = vpop.xlane.xlu1 %789 }
 0x4d0   : > { %1788 = vrcp.f32 %v790_v6 }
 0x4d3   : > { %v787_v7 = vpop.xlane.xlu1 %786 }
 0x4d4   : > { %1790 = vrcp.f32 %v787_v7 }
 0x4d7   : > { %v1781_v8 = vpop.permute.xlu1 %1780 }
 0x4d8   : > { %v1783_v9 = vunpack.i.h.bf16 %v1781_v8  ;;  %v1782_v10 = vunpack.i.l.bf16 %v1781_v8 }
 0x4da   : > { %v1669_v11 = vpack.c.bf16 %v1783_v9, %v1782_v10  ;;  %v1789_v12 = vpop.eup %1788 }
 0x4db   : > { %v794_v15 = vmul.f32 %v1789_v12, %v1785_v1 }
 0x4dc   : > { %1670 = vmatprep.subr.bf16.mxu0 %v1669_v11 }
 0x4dd   : > { %1672 = vmatpush3.bf16.msra.mxu0 %v1669_v11 }
 0x4de   : > { %v1791_v13 = vpop.eup %1790  ;;  %1623 = vmatprep.subr.mxu0 (!%p1544_p1), %v1933_v26 }
 0x4df   : > { %v793_v14 = vmul.f32 %v1791_v13, %v1787_v3 }
 0x4e1   : > { %1615 = vmatprep.mubr.msk.f32.mxu0 %vm772_vm9, %v793_v14 }
 0x4e2   : > { %1616 = vmatmul.mubr.msk.f32.vlgmr.msra.gmra.mrb[2].mxu0 %vm772_vm9, %v794_v15 }
 0x4e3   : > { %1625 = vmatprep.mubr.msk.f32.mxu0 (!%p1544_p1), %vm1934_vm10, %v1933_v26 }
 0x5b5   : > { %v1617_v16 = vpop.f32.mrb[2].mxu0 }
 0x5b6   : > { %v873_v17 = vpop.f32.mrb[3].mxu0 }
 0x5b7   : > { %1620 = vmatprep.mubr.msk.f32.mxu1 %vm686_vm2, %v873_v17 }
 0x5b8   : > { %1621 = vmatmul.mubr.msk.f32.vlgmr.msra.gmra.mrb[2].mxu1 %vm686_vm2, %v1617_v16 }
 0x5b9   : > { %1630 = vmatprep.mubr.msk.f32.mxu1 (!%p1544_p1), %vm1934_vm10, %v1933_v26 }
 0x689   : > { %973 = sbr.rel (%p1544_p1) target bundleno = 3036 (0xbdc), region = 76 }
 0x68b   : > { %v1622_v20 = vpop.f32.mrb[2].mxu1 }
 0x68c   : > { %v967_v21 = vadd.f32 %v1622_v20, %v883_v18  ;;  %v957_v22 = vpop.f32.mrb[3].mxu1 }
 0x68d   : > { %v966_v23 = vadd.f32 %v957_v22, %v882_v19 }
 0x68e   : > { %969 = vst.msk [vmem:[#allocation3 + $0x8] sm:$0xff] %vm582_vm1, %v967_v21 }
 0x68f   : > { %968 = vst.msk [vmem:[#allocation3] sm:$0xff] %vm582_vm1, %v966_v23 }
 0x695   : > { %v975_v24 = vld [vmem:[#allocation3 + $0x8] sm:$0xff] }
 0x696   : > { %v984_v27 = vadd.f32 %v1545_v25, %v975_v24  ;;  %v974_v45 = vld [vmem:[#allocation3] sm:$0xff] }
 0x697   : > { %v983_v47 = vadd.f32 %v1545_v25, %v974_v45 }
 0x698   : > { %1624 = vmatpush3.xpose.msk.msra.mxu0 %vm582_vm1, %v984_v27  ;;  %v1344_v29 = vadd.f32 %v1343_v28, %v984_v27  ;;  %1629 = vmatpush3.msra.mxu1 %v984_v27 }
 0x699   : > { %1679 = vmatprep.subr.bf16.mxu0 %v1935_v42  ;;  %1673 = vmatprep.subr.bf16.mxu1 %v1935_v42 }
 0x69a   : > { %1345 = vst.msk [vmem:[%s2111_s29] sm:$0xff] %vm582_vm1, %v1344_v29 }
 0x69b   : > { %1626 = vmatmul.mubr.msk.f32.vlgmr.msra.gmra.mrb[0].mxu0 %vm582_vm1, %v985_v30 }
 0x69c   : > { %1652 = vmatprep.mubr.msk.f32.mxu0 %vm1934_vm10, %v1933_v26  ;;  %1681 = vmatpush3.bf16.msra.mxu0 %v1680_v43 }
 0x69d   : > { %1682 = vmatprep.subr.bf16.mxu0 %v1935_v42 }
 0x6a0   : > { %1684 = vmatpush3.bf16.msra.mxu0 %v1683_v46 }
 0x6a3   : > { %1653 = vmatmul.mubr.msk.f32.vlgmr.msra.gmra.mrb[2].mxu0 %vm582_vm1, %v983_v47 }
 0x76e   : > { %v1058_v31 = vpop.f32.mrb[0].mxu0 }
 0x76f   : > { %v1627_v32 = vpop.f32.mrb[1].mxu0  ;;  %v1062_v33 = vsel %vm686_vm2, %v1058_v31, -inf }
 0x770   : > { %1063 = vmax.xlane.f32.xlu0 %v1062_v33 }
 0x776   : > { %v1310_v58 = vpop.f32.mrb[2].mxu0 }
 0x777   : > { %v1311_v59 = vadd.f32 %v1551_v57, %v1310_v58  ;;  %v1654_v60 = vpop.f32.mrb[3].mxu0 }
 0x779   : > { %1322 = vrot.lane.b32.xlu1 %v1311_v59, %s1936_s17 }
 0x7eb   : > { %v1323_v7 = vpop.permute.xlu1 %1322 }
 0x7fd   : > { %v1064_v34 = vpop.xlane.xlu0 %1063 }
 0x7fe   : > { %v1065_v35 = vsub.f32 %v1058_v31, %v1064_v34 }
 0x800   : > { %v1066_v36 = vmul.f32 1.442695, %v1065_v35 }
 0x802   : > { %1792 = vpow2.f32 %v1066_v36 }
 0x80c   : > { %v1793_v37 = vpop.eup %1792 }
 0x80d   : > { %v1068_v38 = vsel %vm686_vm2, %v1793_v37, 0.0 }
 0x80e   : > { %1069 = vadd.xlane.f32.xlu0 %v1068_v38 }
 0x89b   : > { %v1070_v48 = vpop.xlane.xlu0 %1069 }
 0x89c   : > { %1794 = vrcp.f32 %v1070_v48 }
 0x8a6   : > { %v1795_v51 = vpop.eup %1794 }
 0x8a7   : > { %v1072_v53 = vmul.f32 %v1795_v51, %v1793_v37 }
 0x8a9   : > { %1631 = vmatmul.mubr.msk.f32.vlgmr.msra.gmra.mrb[0].mxu1 %vm686_vm2, %v1072_v53 }
 0x8aa   : > { %1675 = vmatpush3.bf16.msra.mxu1 %v1674_v52  ;;  %1641 = vmatprep.mubr.msk.f32.mxu1 %vm1934_vm10, %v1933_v26 }
 0x8ab   : > { %1676 = vmatprep.subr.bf16.mxu1 %v1935_v42 }
 0x8ae   : > { %1678 = vmatpush3.bf16.msra.mxu1 %v1677_v56 }
 0x97c   : > { %v1142_v61 = vpop.f32.mrb[0].mxu1 }
 0x97d   : > { %v1632_v62 = vpop.f32.mrb[1].mxu1  ;;  %1642 = vmatmul.mubr.msk.f32.vlgmr.msra.gmra.mrb[2].mxu1 %vm582_vm1, %v1142_v61 }
 0xa50   : > { %v1226_v0 = vpop.f32.mrb[2].mxu1 }
 0xa51   : > { %v1227_v1 = vadd.f32 %v1549_v63, %v1226_v0  ;;  %v1643_v2 = vpop.f32.mrb[3].mxu1 }
 0xa53   : > { %v1314_v3 = vadd.f32 %v1311_v59, %v1227_v1 }
 0xa55   : > { %v1553_v4 = vmul.f32 -1.442695, %v1314_v3 }
 0xa57   : > { %1796 = vpow2.f32 %v1553_v4 }
 0xa61   : > { %v1797_v5 = vpop.eup %1796 }
 0xa62   : > { %v1318_v6 = vadd.f32 1.0, %v1797_v5 }
 0xa64   : > { %1798 = vrcp.f32 %v1318_v6 }
 0xa6e   : > { %v1799_v8 = vpop.eup %1798 }
 0xa6f   : > { %v1325_v9 = vmul.f32 %v1799_v8, %v1323_v7  ;;  %v1332_v14 = vsub.f32 1.0, %v1799_v8 }
 0xa71   : > { %1327 = vrot.lane.b32.xlu1 %v1325_v9, %s1936_s17 }
 0xa75   : > { %1338 = vrot.lane.b32.xlu1 %v983_v47, %s1937_s18 }
 0xae3   : > { %v1328_v10 = vpop.permute.xlu1 %1327 }
 0xae4   : > { %v1330_v11 = vadd.f32 %v1328_v10, %v1227_v1 }
 0xae6   : > { %1800 = vtanh.f32 %v1330_v11 }
 0xae7   : > { %v1339_v13 = vpop.permute.xlu1 %1338 }
 0xae8   : > { %v1341_v16 = vmul.f32 %v1799_v8, %v1339_v13 }
 0xaf0   : > { %v1801_v12 = vpop.eup %1800 }
 0xaf1   : > { %1334 = vrot.lane.b32.xlu0 %v1801_v12, %s1938_s12 }
 0xb63   : > { %v1335_v15 = vpop.permute.xlu0 %1334 }
 0xb64   : > { %v1337_v17 = vmul.f32 %v1335_v15, %v1332_v14 }
 0xb66   : > { %v1342_v18 = vadd.f32 %v1341_v16, %v1337_v17 }
 0xb68   : > { %1347 = vrot.lane.b32.xlu1 %v1342_v18, %s1938_s12 }
 0xbda   : > { %v1348_v19 = vpop.permute.xlu1 %1347 }
 0xbdb   : > { %1350 = vst.msk [vmem:[%s2113_s19] sm:$0xff] %vm582_vm1, %v1348_v19 }
 0xbdc PF: > { %s2340_s25 = sld [smem:[#allocation13_spill]]  ;;  %s2341_s26 = sld [smem:[#allocation22_spill]] }
 0xbdd   : > { %s2343_s13 = sld [smem:[#allocation23_spill]]  ;;  %s1370_s24 = sshll.u32 %s2111_s29, 4  ;;  %s1371_s24 = int_to_ptr.vmem [resolvable:$true] %s1370_s24 }
 0xbde   : > { %s1802_s16 = scalar_lea.vmem %s1371_s24, 128  ;;  %s1939_s14 = smov [#allocation4]  }
 0xbdf   : > { %p1803_p2 = scmp.ne.s32.totalorder %s1371_s24, %s1802_s16  ;;  %s1806_s17 = sshll.u32 %s1939_s14, 4  ;;  %s1807_s17 = int_to_ptr.vmem [resolvable:$false] %s1806_s17 }
 0xbe0   : > { %s1808_s22 = scalar_lea.vmem %s1807_s17, 256  ;;  %p1809_p6 = scmp.lt.s32.totalorder %s1371_s24, %s1807_s17 }
 0xbe1   : > { %p1804_p4 = pnand %p1803_p2, %p2060_p3  ;;  %p1810_p7 = scmp.lt.s32.totalorder %s1808_s22, %s1802_s16 }
 0xbe2   : > { %s1556_s15 = sshll.u32 %s2340_s25, 7  ;;  %s1352_s28 = scalar_lea.sflag [#allocation5], %s2341_s26 }
 0xbe3   : > { %s2217_s30 = scalar_lea.hbm %s2343_s13, %s1556_s15  ;;  %p1805_p5 = pneg %p1804_p4 }
 0xbe4   : > { %p1811_p8 = por %p1810_p7, %p1809_p6 }
 0xbe6   : > { %p1812_p10 = pnand %p1811_p8, %p1805_p5 }
 0xbe8   : > { %1815 = shalt.err (!%p1812_p10)
}
 0xbe9   : > { %s1816_s29 = scalar_lea.hbm %s2217_s30, 128  ;;  %s1820_s12 = scalar_lea.hbm %s2343_s13, 256 }
 0xbea   : > { %p1817_p11 = scmp.ne.s32.totalorder %s2217_s30, %s1816_s29  ;;  %p1821_p0 = scmp.lt.u32.totalorder %s2217_s30, %s2343_s13 }
 0xbeb   : > { %p1822_p1 = scmp.lt.u32.totalorder %s1820_s12, %s1816_s29  ;;  %p1824_p4 = scmp.lt.u32.totalorder %s1816_s29, %s2217_s30 }
 0xbec   : > { %p1818_p12 = pnand %p1817_p11, %p2060_p3 }
 0xbed   : > { %p1823_p2 = por %p1822_p1, %p1821_p0 }
 0xbee   : > { %p1819_p13 = pneg %p1818_p12 }
 0xbef   : > { %p1825_p5 = por %p1824_p4, %p1823_p2 }
 0xbf1   : > { %p1826_p6 = pnand %p1825_p5, %p1819_p13 }
 0xbf3   : > { %1829 = shalt.err (!%p1826_p6)
}
 0xbf4   : > { %1685 = dma.vmem_to_hbm [thread:$0]  (%p2060_p3), %s1371_s24, 128, %s2217_s30, %s1352_s28  }
 0xbf5   : > { %s2344_s17 = sld [smem:[#allocation24_spill]]  ;;  %s1383_s23 = sshll.u32 %s2113_s19, 4  ;;  %s1384_s23 = int_to_ptr.vmem [resolvable:$true] %s1383_s23 }
 0xbf6   : > { %s1357_s29 = scalar_lea.sflag [#allocation7], %s2341_s26  ;;  %s1830_s18 = scalar_lea.vmem %s1384_s23, 128 }
 0xbf7   : > { %p1831_p7 = scmp.ne.s32.totalorder %s1384_s23, %s1830_s18  ;;  %s1940_s12 = smov [#allocation6]  }
 0xbf8   : > { %s1834_s20 = sshll.u32 %s1940_s12, 4  ;;  %s1835_s20 = int_to_ptr.vmem [resolvable:$false] %s1834_s20 }
 0xbf9   : > { %p1832_p8 = pnand %p1831_p7, %p2060_p3  ;;  %s1836_s21 = scalar_lea.vmem %s1835_s20, 256 }
 0xbfa   : > { %p1837_p11 = scmp.lt.s32.totalorder %s1384_s23, %s1835_s20  ;;  %p1838_p12 = scmp.lt.s32.totalorder %s1836_s21, %s1830_s18 }
 0xbfb   : > { %s2243_s22 = scalar_lea.hbm %s2344_s17, %s1556_s15  ;;  %p1833_p10 = pneg %p1832_p8 }
 0xbfc   : > { %p1839_p13 = por %p1838_p12, %p1837_p11 }
 0xbfe   : > { %p1840_p0 = pnand %p1839_p13, %p1833_p10 }
 0xc00   : > { %1843 = shalt.err (!%p1840_p0)
}
 0xc01   : > { %s1844_s19 = scalar_lea.hbm %s2243_s22, 128  ;;  %s1848_s15 = scalar_lea.hbm %s2344_s17, 256 }
 0xc02   : > { %p1845_p1 = scmp.ne.s32.totalorder %s2243_s22, %s1844_s19  ;;  %p1849_p5 = scmp.lt.u32.totalorder %s2243_s22, %s2344_s17 }
 0xc03   : > { %p1850_p6 = scmp.lt.u32.totalorder %s1848_s15, %s1844_s19  ;;  %p1852_p8 = scmp.lt.u32.totalorder %s1844_s19, %s2243_s22 }
 0xc04   : > { %p1846_p2 = pnand %p1845_p1, %p2060_p3 }
 0xc05   : > { %p1851_p7 = por %p1850_p6, %p1849_p5 }
 0xc06   : > { %p1847_p4 = pneg %p1846_p2 }
 0xc07   : > { %p1853_p10 = por %p1852_p8, %p1851_p7 }
 0xc09   : > { %p1854_p11 = pnand %p1853_p10, %p1847_p4 }
 0xc0b   : > { %1857 = shalt.err (!%p1854_p11)
}
 0xc0c   : > { %1686 = dma.vmem_to_hbm [thread:$0]  (%p2060_p3), %s1384_s23, 128, %s2243_s22, %s1357_s29  }
 0xc0d PF: > { %s2345_s28 = sld [smem:[#allocation16_spill]]  ;;  %s2346_s16 = sld [smem:[#allocation10_spill]] }
 0xc13   : > { %p1696_p12 = scmp.ge.s32.totalorder %s2345_s28, 2  ;;  %s1395_s18 = sand.u32 1, %s2346_s16  }
 0xc14   : > { %s1396_s12 = scalar_lea.sflag [#allocation5], %s1395_s18 }
 0xc15   : > { %p1690_p13 = pnand %p1696_p12, %p2070_p9 }
 0xc17   : > { %1891 = dma.done.wait (!%p1690_p13), %s1396_s12, 128  }
 0xc18   : > { %1893 = vsyncadd (!%p1690_p13), %s1396_s12, 4294967168  ;;  %s1405_s20 = scalar_lea.sflag [#allocation7], %s1395_s18 }
 0xc19   : > { %1895 = dma.done.wait (!%p1690_p13), %s1405_s20, 128  }
 0xc1a   : > { %1897 = vsyncadd (!%p1690_p13), %s1405_s20, 4294967168  ;;  %s30_s15 = sadd.s32 1, %s2345_s28   ;;  %s2348_s25 = sld [smem:[#allocation11_spill]] }
 0xc1b   : > { %p27_p0 = scmp.ge.s32.totalorder %s30_s15, 10   ;;  %s2349_s26 = sld [smem:[#allocation12_spill]] }
 0xc1c   : > { %s2350_s27 = sld [smem:[#allocation21_spill]]  ;;  %s2351_s28 = sld [smem:[#allocation14_spill]] }
 0xc1d   : > { %s2352_s29 = sld [smem:[#allocation15_spill]]  ;;  %s2353_s30 = sld [smem:[#allocation17_spill]] }
 0xc1e   : > { %s2354_s14 = sld [smem:[#allocation19_spill]]  ;;  %29 = sbr.rel (!%p27_p0) target bundleno = 10 (0xa), region = 137 }
 0xc25   :  { %1410 = vsyncpa [#allocation5], 1 }
 0xc26   :  { %1412 = vsyncpa [#allocation5 + $0x1], 1 }
 0xc27   :  { %1413 = vsyncpa [#allocation7], 1 }
 0xc28   :  { %1415 = vsyncpa [#allocation7 + $0x1], 1 }

// kernel: tpu_custom_call.1
= control target key start
LH: loop header
LB: loop body
LE: loop exit
PB: predicated region body
PF: predicated region fallthrough
CT: control target
= control target key end

     0   :  { %s2292_s0 = inlined_call_operand.vmem [shape: f32[2,16,32], index: 0, kind: input, shape index: {}]   ;;  %s2293_s1 = inlined_call_operand.vmem [shape: f32[1,32], index: 1, kind: input, shape index: {}]   ;;  %s2294_s2 = inlined_call_operand.vmem [shape: f32[1,32], index: 2, kind: input, shape index: {}]   ;;  %s2295_s3 = inlined_call_operand.vmem [shape: f32[4,32,24], index: 3, kind: input, shape index: {}]   ;;  %s2296_s4 = inlined_call_operand.vmem [shape: f32[4,1,24], index: 4, kind: input, shape index: {}]   ;;  %s2297_s5 = inlined_call_operand.vmem [shape: f32[4,8,32], index: 5, kind: input, shape index: {}]   ;;  %s2298_s6 = inlined_call_operand.vmem [shape: f32[1,32], index: 6, kind: input, shape index: {}]   ;;  %s2299_s7 = inlined_call_operand.vmem [shape: f32[8,32], index: 7, kind: input, shape index: {}]   ;;  %s2300_s8 = inlined_call_operand.vmem [shape: f32[32,96], index: 8, kind: input, shape index: {}]   ;;  %s2301_s9 = inlined_call_operand.vmem [shape: f32[32,96], index: 9, kind: input, shape index: {}]   ;;  %s2302_s10 = inlined_call_operand.vmem [shape: f32[1,96], index: 10, kind: input, shape index: {}]   ;;  %s2303_s11 = inlined_call_operand.vmem [shape: f32[1,96], index: 11, kind: input, shape index: {}]   ;;  %s2304_s12 = inlined_call_operand.hbm [shape: f32[2,8,32], index: 12, kind: output, shape index: {0}]   ;;  %s2305_s13 = inlined_call_operand.hbm [shape: f32[2,8,32], index: 13, kind: output, shape index: {1}]  }
   0x1   :  { %2323 = sst [smem:[#allocation23_spill]] %s2304_s12 }
   0x2   :  { %2324 = sst [smem:[#allocation24_spill]] %s2305_s13 }
   0x3   :  { %19 = vsyncpa [#allocation5], 0 }
   0x4   :  { %21 = vsyncpa [#allocation5 + $0x1], 0 }
   0x5   :  { %22 = vsyncpa [#allocation7], 0 }
   0x6   :  { %24 = vsyncpa [#allocation7 + $0x1], 0  ;;  %s2011_s25 = smov 0   ;;  %s2013_s26 = smov 0  }
   0x7   :  { %s2015_s27 = smov 0   ;;  %s2017_s28 = smov 0  }
   0x8   :  { %s2019_s29 = smov 0   ;;  %s2021_s30 = smov 0  }
   0x9   :  { %s2023_s14 = smov 0   ;;  %s2025_s15 = smov 0  }
   0xa LB: > { %2325 = sst [smem:[#allocation10_spill]] %s1900_s25  ;;  %s1518_s16 = sadd.s32 4294967295, %s1928_s15   ;;  %s1928_s15 = sphi %s2025_s15, %s30_s15   ;;  %s1924_s14 = sphi %s2023_s14, %s2354_s14   ;;  %s1920_s30 = sphi %s2021_s30, %s2353_s30   ;;  %s1916_s29 = sphi %s2019_s29, %s2352_s29   ;;  %s1912_s28 = sphi %s2017_s28, %s2351_s28   ;;  %s1908_s27 = sphi %s2015_s27, %s2350_s27   ;;  %s1904_s26 = sphi %s2013_s26, %s2349_s26   ;;  %s1900_s25 = sphi %s2011_s25, %s2348_s25  }
   0xb   : > { %2326 = sst [smem:[#allocation11_spill]] %s1904_s26  ;;  %s1519_s17 = sadd.s32 4294967294, %s1928_s15  }
   0xc   : > { %2327 = sst [smem:[#allocation12_spill]] %s1908_s27  ;;  %s39_s18 = sadd.s32 1, %s1920_s30 }
   0xd   : > { %2328 = sst [smem:[#allocation13_spill]] %s1916_s29  ;;  %p40_p0 = scmp.ge.s32.totalorder %s39_s18, 4 }
   0xe   : > { %2329 = sst [smem:[#allocation14_spill]] %s1920_s30  ;;  %s42_s19 = sadd.s32 1, %s1924_s14 }
   0xf   : > { %2330 = sst [smem:[#allocation15_spill]] %s1924_s14  ;;  %p331_p1 = scmp.ne.s32.totalorder %s1908_s27, %s1904_s26 }
  0x10   : > { %2331 = sst [smem:[#allocation16_spill]] %s1928_s15  ;;  %p332_p2 = scmp.eq.s32.totalorder %s1518_s16, 7 }
  0x11   : > { %s2356_s18 = smov (%p40_p0, %s39_s18), 0  ;;  %s2358_s19 = smov (!%p40_p0, %s42_s19), %s1924_s14 }
  0x12   : > { %2332 = sst [smem:[#allocation17_spill]] %s2356_s18  ;;  %p2060_p3 = por %p332_p2, %p331_p1 }
  0x13   : > { %p337_p4 = scmp.ne.s32.totalorder %s1904_s26, %s1900_s25  ;;  %p44_p5 = scmp.ge.s32.totalorder %s2358_s19, 2 }
  0x14   : > { %s2333_s20 = scalar_select %p2060_p3, 1, 0 }
  0x15   : > { %p338_p6 = scmp.eq.s32.totalorder %s1519_s17, 7  ;;  %p1522_p7 = scmp.ge.s32.totalorder %s1928_s15, 1 }
  0x16   : > { %2334 = sst [smem:[#allocation18_spill]] %s2333_s20  ;;  %p435_p8 = scmp.lt.s32.totalorder %s1928_s15, 9 }
  0x17   : > { %s2360_s19 = smov (%p44_p5, %s2358_s19), 0  ;;  %p2070_p9 = por %p338_p6, %p337_p4 }
  0x18   : > { %2335 = sst [smem:[#allocation19_spill]] %s2360_s19  ;;  %p436_p10 = pnand %p1522_p7, %p435_p8 }
  0x19   : > { %s2336_s21 = scalar_select %p2070_p9, 1, 0 }
  0x1a   : > { %s318_s22 = ssub.s32 %s1924_s14, %s2360_s19  ;;  %s321_s23 = sadd.s32 1, %s1908_s27 }
  0x1b   : > { %2337 = sst [smem:[#allocation20_spill]] %s2336_s21  ;;  %p319_p11 = scmp.eq.s32.totalorder %s318_s22, 0 }
  0x1c   : > { %439 = sbr.rel (%p436_p10) target bundleno = 3085 (0xc0d), region = 68 }
  0x1d   : > { %s2078_s24 = scalar_select %p319_p11, %s1908_s27, %s321_s23  }
  0x1f   : > { %2338 = sst [smem:[#allocation21_spill]] %s2078_s24 }
  0x23   : > { %s2081_s16 = sand.u32 1, %s1904_s26   ;;  %p496_p12 = scmp.lt.s32.totalorder %s1916_s29, 1 }
  0x24   : > { %2339 = sst [smem:[#allocation22_spill]] %s2081_s16  ;;  %s1523_s17 = sshll.u32 %s2081_s16, 3 }
  0x25   : > { %p501_p13 = scmp.lt.s32.totalorder %s1912_s28, 3  ;;  %s2113_s19 = scalar_lea.vmem [#allocation6], %s1523_s17 }
  0x26   : > { %s497_s18 = scalar_select %p496_p12, %s1916_s29, 1 }
  0x27   : > { %s2088_s30 = scalar_select %p501_p13, %s1912_s28, 3 }
  0x28   : > { %s1560_s22 = sshll.u32 %s497_s18, 4  ;;  %s2111_s29 = scalar_lea.vmem [#allocation4], %s1523_s17 }
  0x29   : > { %s2093_s14 = scalar_lea.vmem %s2292_s0, %s1560_s22  ;;  %s1561_s24 = sshll.u32 %s2088_s30, 5 }
  0x2a   : > { %s2099_s21 = scalar_lea.vmem %s2295_s3, %s1561_s24  ;;  %s508_s13 = scalar_lea.vmem %s2296_s4, %s2088_s30 }
  0x2b   : > { %s1529_s12 = sshll.u32 %s2088_s30, 3  ;;  %p1530_p0 = scmp.ne.s32.totalorder %s1912_s28, 0 }
  0x2c   : > { %s2109_s18 = scalar_lea.vmem %s2297_s5, %s1529_s12  ;;  %v517_v0 = vld [vmem:[%s2093_s14] sm:$0xff] (!%p1530_p0)  ;;  %vm519_vm0 = vcmask (!%p1530_p0), 261120   ;;  %v518_v1 = vld [vmem:[%s2093_s14 + $0x8] sm:$0xff] (!%p1530_p0)  ;;  %v1930_v3 = vmov (!%p1530_p0), 0.0  }
  0x2d   : > { %516 = sbr.rel (%p1530_p0) target bundleno = 363 (0x16b), region = 72  ;;  %v520_v2 = vsel (!%p1530_p0), %vm519_vm0, %v517_v0, 0.0  ;;  %567 = vst.msk [vmem:[#allocation3] sm:$0xff] (!%p1530_p0), %vm519_vm0, %v1930_v3  ;;  %568 = vst.msk [vmem:[#allocation3 + $0x8] sm:$0xff] (!%p1530_p0), %vm519_vm0, %v1930_v3  ;;  %v523_v4 = vsel (!%p1530_p0), %vm519_vm0, %v518_v1, 0.0 }
  0x2e   : > { %521 = vadd.xlane.f32.xlu0 (!%p1530_p0), %v520_v2  ;;  %v1531_v22 = vld [vmem:[%s2293_s1] ss:$0 sm:$0xff] (!%p1530_p0) }
  0x2f   : > { %v1532_v24 = vld [vmem:[%s2294_s2] ss:$0 sm:$0xff] (!%p1530_p0) }
  0x32   : > { %524 = vadd.xlane.f32.xlu0 (!%p1530_p0), %v523_v4 }
  0xbb   : > { %v522_v5 = vpop.xlane.xlu0 %521 }
  0xbc   : > { %v527_v6 = vmul.f32 0.03125, %v522_v5 }
  0xbe   : > { %v529_v7 = vsub.f32 %v517_v0, %v527_v6 }
  0xbf   : > { %v525_v8 = vpop.xlane.xlu0 %524 }
  0xc0   : > { %v528_v9 = vmul.f32 0.03125, %v525_v8  ;;  %v531_v10 = vmul.f32 %v529_v7, %v529_v7 }
  0xc2   : > { %v530_v11 = vsub.f32 %v518_v1, %v528_v9  ;;  %v533_v12 = vsel %vm519_vm0, %v531_v10, 0.0 }
  0xc3   : > { %534 = vadd.xlane.f32.xlu1 %v533_v12 }
  0xc4   : > { %v532_v13 = vmul.f32 %v530_v11, %v530_v11 }
  0xc6   : > { %v536_v14 = vsel %vm519_vm0, %v532_v13, 0.0 }
  0xc7   : > { %537 = vadd.xlane.f32.xlu1 %v536_v14 }
 0x150   : > { %v535_v15 = vpop.xlane.xlu1 %534 }
 0x151   : > { %v539_v16 = vmul.f32 0.03125, %v535_v15 }
 0x153   : > { %v541_v17 = vadd.f32 1e-05, %v539_v16 }
 0x154   : > { %v538_v18 = vpop.xlane.xlu1 %537 }
 0x155   : > { %1770 = vrsqrt.f32 %v541_v17  ;;  %v540_v19 = vmul.f32 0.03125, %v538_v18 }
 0x157   : > { %v542_v20 = vadd.f32 1e-05, %v540_v19 }
 0x159   : > { %1772 = vrsqrt.f32 %v542_v20 }
 0x15f   : > { %v1771_v21 = vpop.eup %1770 }
 0x160   : > { %v545_v23 = vmul.f32 %v1771_v21, %v529_v7 }
 0x162   : > { %v554_v25 = vmul.f32 %v1531_v22, %v545_v23 }
 0x163   : > { %v1773_v26 = vpop.eup %1772 }
 0x164   : > { %v563_v27 = vadd.f32 %v1532_v24, %v554_v25  ;;  %v546_v28 = vmul.f32 %v1773_v26, %v530_v11 }
 0x166   : > { %565 = vst.msk [vmem:[#allocation2] sm:$0xff] %vm519_vm0, %v563_v27  ;;  %v555_v29 = vmul.f32 %v1531_v22, %v546_v28 }
 0x168   : > { %v564_v30 = vadd.f32 %v1532_v24, %v555_v29 }
 0x16a   : > { %566 = vst.msk [vmem:[#allocation2 + $0x8] sm:$0xff] %vm519_vm0, %v564_v30 }
 0x16b PF: > { %v571_v31 = vld [vmem:[%s2099_s21] sm:$0xff]  ;;  %v572_v32 = vld [vmem:[%s2099_s21 + $0x8] sm:$0xff]  ;;  %v573_v33 = vld [vmem:[%s2099_s21 + $0x10] sm:$0xff]  ;;  %vm582_vm1 = vcmask 261120   ;;  %vm686_vm2 = vcmask 64512   ;;  %v664_v49 = vlaneseq  ;;  %vm772_vm9 = vcmask 130048  }
 0x16c   : > { %v1655_v34 = vpack.c.bf16 %v572_v32, %v571_v31  ;;  %v574_v35 = vld [vmem:[%s2099_s21 + $0x18] sm:$0xff]  ;;  %v1533_v39 = vld [vmem:[%s508_s13] ss:$0 sm:$0xff]  ;;  %s1931_s21 = smov 120   ;;  %vm1664_vm3 = vmpackc.low %vm686_vm2, %vm686_vm2  ;;  %s1932_s13 = smov 112  }
 0x16d   : > { %v569_v36 = vld [vmem:[#allocation2] sm:$0xff]  ;;  %v1659_v37 = vpack.c.bf16 %v574_v35, %v573_v33  ;;  %v665_v50 = vshrl.u32 %v664_v49, 7  ;;  %v668_v51 = vand.u32 127, %v664_v49  ;;  %v883_v18 = vld [vmem:[#allocation3 + $0x8] sm:$0xff]  ;;  %v882_v19 = vld [vmem:[#allocation3] sm:$0xff]  ;;  %p1544_p1 = scmp.ne.s32.totalorder %s1912_s28, 3 }
 0x16e   : > { %1601 = vmatprep.mubr.msk.f32.mxu0 %vm582_vm1, %v569_v36  ;;  %1656 = vmatprep.subr.bf16.mxu0 %v1655_v34  ;;  %v884_v5 = vld [vmem:[%s2109_s18] sm:$0xff]  ;;  %v1933_v26 = vmov (!%p1544_p1), 0.0   ;;  %v1343_v28 = vld [vmem:[%s2093_s14 + $0x8] sm:$0xff] (!%p1544_p1)  ;;  %vm1934_vm10 = vmmov (!%p1544_p1), 0   ;;  %s1936_s17 = smov (!%p1544_p1), 64   ;;  %s1937_s18 = smov (!%p1544_p1), 32  }
 0x16f   : > { %1658 = vmatpush3.bf16.msra.mxu0 %v1655_v34  ;;  %v666_v52 = vadd.s32 8, %v665_v50  ;;  %vm675_vm4 = vcmp.ge.s32.totalorder %v668_v51, 4  ;;  %vm676_vm5 = vcmp.lt.s32.totalorder %v668_v51, 8  ;;  %v1545_v25 = vld [vmem:[%s2298_s6] ss:$0 sm:$0xff] (!%p1544_p1)  ;;  %v1147_v50 = vld [vmem:[%s2300_s8 + $0x8] sm:$0xff] (!%p1544_p1) }
 0x170   : > { %1660 = vmatprep.subr.bf16.mxu0 %v1659_v37  ;;  %vm677_vm7 = vmand %vm675_vm4, %vm676_vm5  ;;  %v985_v30 = vld [vmem:[%s2299_s7] sm:$0xff] (!%p1544_p1)  ;;  %s1938_s12 = smov (!%p1544_p1), 96  }
 0x171   : > { %v570_v38 = vld [vmem:[#allocation2 + $0x8] sm:$0xff]  ;;  %vm672_vm6 = vcmp.gt.s32.totalorder %v668_v51, %v666_v52  ;;  %v1146_v49 = vld [vmem:[%s2300_s8] sm:$0xff] (!%p1544_p1) }
 0x172   : > { %vm679_vm8 = vmor %vm672_vm6, %vm677_vm7  ;;  %v1674_v52 = vpack.c.bf16 (!%p1544_p1), %v1147_v50, %v1146_v49 }
 0x173   : > { %1662 = vmatpush3.bf16.msra.mxu0 %v1659_v37 }
 0x176   : > { %1602 = vmatmul.mubr.msk.f32.vlgmr.msra.gmra.mrb[0].mxu0 %vm582_vm1, %v570_v38 }
 0x249   : > { %v1603_v40 = vpop.f32.mrb[0].mxu0 }
 0x24a   : > { %v661_v41 = vadd.f32 %v1603_v40, %v1533_v39  ;;  %v655_v42 = vpop.f32.mrb[1].mxu0  ;;  %v1231_v40 = vld [vmem:[%s2301_s9 + $0x8] sm:$0xff] (!%p1544_p1) }
 0x24b   : > { %v656_v43 = vadd.f32 %v1533_v39, %v655_v42  ;;  %v1230_v39 = vld [vmem:[%s2301_s9] sm:$0xff] (!%p1544_p1)  ;;  %v1935_v42 = vmov (!%p1544_p1), 0.0|0.0  }
 0x24d   : > { %1608 = vmatprep.mubr.msk.f32.mxu1 %vm686_vm2, %v656_v43  ;;  %v1774_v44 = vpack.i.bf16 %v661_v41, %v656_v43  ;;  %v1680_v43 = vpack.c.bf16 (!%p1544_p1), %v1231_v40, %v1230_v39 }
 0x24f   : > { %1775 = vrot.lane.b32.xlu0 %v1774_v44, %s1931_s21 }
 0x2c1   : > { %v1776_v45 = vpop.permute.xlu0 %1775 }
 0x2c2   : > { %v1778_v46 = vunpack.i.h.bf16 %v1776_v45  ;;  %v1777_v47 = vunpack.i.l.bf16 %v1776_v45 }
 0x2c4   : > { %v1663_v48 = vpack.c.bf16 %v1778_v46, %v1777_v47 }
 0x2c6   : > { %1665 = vmatprep.subr.msk.bf16.mxu1 %vm1664_vm3, %v1663_v48 }
 0x2c7   : > { %1668 = vmatpush3.bf16.xpose.msk.msra.mxu1 %vm1664_vm3, %v1663_v48 }
 0x2c8   : > { %1618 = vmatprep.subr.mxu1 %v884_v5 }
 0x2ce   : > { %1609 = vmatmul.mubr.msk.f32.vlgmr.msra.gmra.mrb[0].mxu1 %vm686_vm2, %v661_v41  ;;  %v1232_v41 = vld [vmem:[%s2301_s9 + $0x10] sm:$0xff] (!%p1544_p1) }
 0x2cf   : > { %1619 = vmatpush3.msra.mxu1 %v884_v5 }
 0x2d0   : > { %1628 = vmatprep.subr.mxu1 (!%p1544_p1), %v1933_v26 }
 0x3a1   : > { %v1610_v53 = vpop.f32.mrb[0].mxu1 }
 0x3a2   : > { %v771_v54 = vsel %vm679_vm8, -1e+09, %v1610_v53  ;;  %v761_v55 = vpop.f32.mrb[1].mxu1 }
 0x3a3   : > { %v770_v56 = vsel %vm677_vm7, -1e+09, %v761_v55  ;;  %v776_v57 = vsel %vm772_vm9, %v771_v54, -inf  ;;  %v1149_v55 = vld [vmem:[%s2300_s8 + $0x18] sm:$0xff] (!%p1544_p1) }
 0x3a4   : > { %777 = vmax.xlane.f32.xlu1 %v776_v57  ;;  %v773_v58 = vsel %vm772_vm9, %v770_v56, -inf  ;;  %v1551_v57 = vld [vmem:[%s2303_s11] ss:$0 sm:$0xff] (!%p1544_p1) }
 0x3a5   : > { %774 = vmax.xlane.f32.xlu0 %v773_v58 }
 0x431   : > { %v778_v59 = vpop.xlane.xlu1 %777 }
 0x432   : > { %v780_v60 = vsub.f32 %v771_v54, %v778_v59  ;;  %v775_v61 = vpop.xlane.xlu0 %774  ;;  %v1148_v54 = vld [vmem:[%s2300_s8 + $0x10] sm:$0xff] (!%p1544_p1) }
 0x433   : > { %v779_v62 = vsub.f32 %v770_v56, %v775_v61  ;;  %v1677_v56 = vpack.c.bf16 (!%p1544_p1), %v1149_v55, %v1148_v54 }
 0x434   : > { %v783_v63 = vmul.f32 1.442695, %v780_v60 }
 0x435   : > { %v781_v0 = vmul.f32 1.442695, %v779_v62 }
 0x436   : > { %1784 = vpow2.f32 %v783_v63  ;;  %v1549_v63 = vld [vmem:[%s2302_s10] ss:$0 sm:$0xff] (!%p1544_p1) }
 0x437   : > { %1786 = vpow2.f32 %v781_v0 }
 0x440   : > { %v1785_v1 = vpop.eup %1784 }
 0x441   : > { %v788_v2 = vsel %vm772_vm9, %v1785_v1, 0.0  ;;  %v1787_v3 = vpop.eup %1786 }
 0x442   : > { %789 = vadd.xlane.f32.xlu1 %v788_v2  ;;  %v785_v4 = vsel %vm772_vm9, %v1787_v3, 0.0 }
 0x446   : > { %786 = vadd.xlane.f32.xlu1 %v785_v4 }
 0x457   : > { %1780 = vrot.lane.b32.xlu1 %v1774_v44, %s1932_s13  ;;  %v1233_v44 = vld [vmem:[%s2301_s9 + $0x18] sm:$0xff] (!%p1544_p1) }
 0x458   : > { %v1683_v46 = vpack.c.bf16 (!%p1544_p1), %v1233_v44, %v1232_v41 }
 0x4cf   : > { %v790_v6 = vpop.xlane.xlu1 %789 }
 0x4d0   : > { %1788 = vrcp.f32 %v790_v6 }
 0x4d3   : > { %v787_v7 = vpop.xlane.xlu1 %786 }
 0x4d4   : > { %1790 = vrcp.f32 %v787_v7 }
 0x4d7   : > { %v1781_v8 = vpop.permute.xlu1 %1780 }
 0x4d8   : > { %v1783_v9 = vunpack.i.h.bf16 %v1781_v8  ;;  %v1782_v10 = vunpack.i.l.bf16 %v1781_v8 }
 0x4da   : > { %v1669_v11 = vpack.c.bf16 %v1783_v9, %v1782_v10  ;;  %v1789_v12 = vpop.eup %1788 }
 0x4db   : > { %v794_v15 = vmul.f32 %v1789_v12, %v1785_v1 }
 0x4dc   : > { %1670 = vmatprep.subr.bf16.mxu0 %v1669_v11 }
 0x4dd   : > { %1672 = vmatpush3.bf16.msra.mxu0 %v1669_v11 }
 0x4de   : > { %v1791_v13 = vpop.eup %1790  ;;  %1623 = vmatprep.subr.mxu0 (!%p1544_p1), %v1933_v26 }
 0x4df   : > { %v793_v14 = vmul.f32 %v1791_v13, %v1787_v3 }
 0x4e1   : > { %1615 = vmatprep.mubr.msk.f32.mxu0 %vm772_vm9, %v793_v14 }
 0x4e2   : > { %1616 = vmatmul.mubr.msk.f32.vlgmr.msra.gmra.mrb[2].mxu0 %vm772_vm9, %v794_v15 }
 0x4e3   : > { %1625 = vmatprep.mubr.msk.f32.mxu0 (!%p1544_p1), %vm1934_vm10, %v1933_v26 }
 0x5b5   : > { %v1617_v16 = vpop.f32.mrb[2].mxu0 }
 0x5b6   : > { %v873_v17 = vpop.f32.mrb[3].mxu0 }
 0x5b7   : > { %1620 = vmatprep.mubr.msk.f32.mxu1 %vm686_vm2, %v873_v17 }
 0x5b8   : > { %1621 = vmatmul.mubr.msk.f32.vlgmr.msra.gmra.mrb[2].mxu1 %vm686_vm2, %v1617_v16 }
 0x5b9   : > { %1630 = vmatprep.mubr.msk.f32.mxu1 (!%p1544_p1), %vm1934_vm10, %v1933_v26 }
 0x689   : > { %973 = sbr.rel (%p1544_p1) target bundleno = 3036 (0xbdc), region = 76 }
 0x68b   : > { %v1622_v20 = vpop.f32.mrb[2].mxu1 }
 0x68c   : > { %v967_v21 = vadd.f32 %v1622_v20, %v883_v18  ;;  %v957_v22 = vpop.f32.mrb[3].mxu1 }
 0x68d   : > { %v966_v23 = vadd.f32 %v957_v22, %v882_v19 }
 0x68e   : > { %969 = vst.msk [vmem:[#allocation3 + $0x8] sm:$0xff] %vm582_vm1, %v967_v21 }
 0x68f   : > { %968 = vst.msk [vmem:[#allocation3] sm:$0xff] %vm582_vm1, %v966_v23 }
 0x695   : > { %v975_v24 = vld [vmem:[#allocation3 + $0x8] sm:$0xff] }
 0x696   : > { %v984_v27 = vadd.f32 %v1545_v25, %v975_v24  ;;  %v974_v45 = vld [vmem:[#allocation3] sm:$0xff] }
 0x697   : > { %v983_v47 = vadd.f32 %v1545_v25, %v974_v45 }
 0x698   : > { %1624 = vmatpush3.xpose.msk.msra.mxu0 %vm582_vm1, %v984_v27  ;;  %v1344_v29 = vadd.f32 %v1343_v28, %v984_v27  ;;  %1629 = vmatpush3.msra.mxu1 %v984_v27 }
 0x699   : > { %1679 = vmatprep.subr.bf16.mxu0 %v1935_v42  ;;  %1673 = vmatprep.subr.bf16.mxu1 %v1935_v42 }
 0x69a   : > { %1345 = vst.msk [vmem:[%s2111_s29] sm:$0xff] %vm582_vm1, %v1344_v29 }
 0x69b   : > { %1626 = vmatmul.mubr.msk.f32.vlgmr.msra.gmra.mrb[0].mxu0 %vm582_vm1, %v985_v30 }
 0x69c   : > { %1652 = vmatprep.mubr.msk.f32.mxu0 %vm1934_vm10, %v1933_v26  ;;  %1681 = vmatpush3.bf16.msra.mxu0 %v1680_v43 }
 0x69d   : > { %1682 = vmatprep.subr.bf16.mxu0 %v1935_v42 }
 0x6a0   : > { %1684 = vmatpush3.bf16.msra.mxu0 %v1683_v46 }
 0x6a3   : > { %1653 = vmatmul.mubr.msk.f32.vlgmr.msra.gmra.mrb[2].mxu0 %vm582_vm1, %v983_v47 }
 0x76e   : > { %v1058_v31 = vpop.f32.mrb[0].mxu0 }
 0x76f   : > { %v1627_v32 = vpop.f32.mrb[1].mxu0  ;;  %v1062_v33 = vsel %vm686_vm2, %v1058_v31, -inf }
 0x770   : > { %1063 = vmax.xlane.f32.xlu0 %v1062_v33 }
 0x776   : > { %v1310_v58 = vpop.f32.mrb[2].mxu0 }
 0x777   : > { %v1311_v59 = vadd.f32 %v1551_v57, %v1310_v58  ;;  %v1654_v60 = vpop.f32.mrb[3].mxu0 }
 0x779   : > { %1322 = vrot.lane.b32.xlu1 %v1311_v59, %s1936_s17 }
 0x7eb   : > { %v1323_v7 = vpop.permute.xlu1 %1322 }
 0x7fd   : > { %v1064_v34 = vpop.xlane.xlu0 %1063 }
 0x7fe   : > { %v1065_v35 = vsub.f32 %v1058_v31, %v1064_v34 }
 0x800   : > { %v1066_v36 = vmul.f32 1.442695, %v1065_v35 }
 0x802   : > { %1792 = vpow2.f32 %v1066_v36 }
 0x80c   : > { %v1793_v37 = vpop.eup %1792 }
 0x80d   : > { %v1068_v38 = vsel %vm686_vm2, %v1793_v37, 0.0 }
 0x80e   : > { %1069 = vadd.xlane.f32.xlu0 %v1068_v38 }
 0x89b   : > { %v1070_v48 = vpop.xlane.xlu0 %1069 }
 0x89c   : > { %1794 = vrcp.f32 %v1070_v48 }
 0x8a6   : > { %v1795_v51 = vpop.eup %1794 }
 0x8a7   : > { %v1072_v53 = vmul.f32 %v1795_v51, %v1793_v37 }
 0x8a9   : > { %1631 = vmatmul.mubr.msk.f32.vlgmr.msra.gmra.mrb[0].mxu1 %vm686_vm2, %v1072_v53 }
 0x8aa   : > { %1675 = vmatpush3.bf16.msra.mxu1 %v1674_v52  ;;  %1641 = vmatprep.mubr.msk.f32.mxu1 %vm1934_vm10, %v1933_v26 }
 0x8ab   : > { %1676 = vmatprep.subr.bf16.mxu1 %v1935_v42 }
 0x8ae   : > { %1678 = vmatpush3.bf16.msra.mxu1 %v1677_v56 }
 0x97c   : > { %v1142_v61 = vpop.f32.mrb[0].mxu1 }
 0x97d   : > { %v1632_v62 = vpop.f32.mrb[1].mxu1  ;;  %1642 = vmatmul.mubr.msk.f32.vlgmr.msra.gmra.mrb[2].mxu1 %vm582_vm1, %v1142_v61 }
 0xa50   : > { %v1226_v0 = vpop.f32.mrb[2].mxu1 }
 0xa51   : > { %v1227_v1 = vadd.f32 %v1549_v63, %v1226_v0  ;;  %v1643_v2 = vpop.f32.mrb[3].mxu1 }
 0xa53   : > { %v1314_v3 = vadd.f32 %v1311_v59, %v1227_v1 }
 0xa55   : > { %v1553_v4 = vmul.f32 -1.442695, %v1314_v3 }
 0xa57   : > { %1796 = vpow2.f32 %v1553_v4 }
 0xa61   : > { %v1797_v5 = vpop.eup %1796 }
 0xa62   : > { %v1318_v6 = vadd.f32 1.0, %v1797_v5 }
 0xa64   : > { %1798 = vrcp.f32 %v1318_v6 }
 0xa6e   : > { %v1799_v8 = vpop.eup %1798 }
 0xa6f   : > { %v1325_v9 = vmul.f32 %v1799_v8, %v1323_v7  ;;  %v1332_v14 = vsub.f32 1.0, %v1799_v8 }
 0xa71   : > { %1327 = vrot.lane.b32.xlu1 %v1325_v9, %s1936_s17 }
 0xa75   : > { %1338 = vrot.lane.b32.xlu1 %v983_v47, %s1937_s18 }
 0xae3   : > { %v1328_v10 = vpop.permute.xlu1 %1327 }
 0xae4   : > { %v1330_v11 = vadd.f32 %v1328_v10, %v1227_v1 }
 0xae6   : > { %1800 = vtanh.f32 %v1330_v11 }
 0xae7   : > { %v1339_v13 = vpop.permute.xlu1 %1338 }
 0xae8   : > { %v1341_v16 = vmul.f32 %v1799_v8, %v1339_v13 }
 0xaf0   : > { %v1801_v12 = vpop.eup %1800 }
 0xaf1   : > { %1334 = vrot.lane.b32.xlu0 %v1801_v12, %s1938_s12 }
 0xb63   : > { %v1335_v15 = vpop.permute.xlu0 %1334 }
 0xb64   : > { %v1337_v17 = vmul.f32 %v1335_v15, %v1332_v14 }
 0xb66   : > { %v1342_v18 = vadd.f32 %v1341_v16, %v1337_v17 }
 0xb68   : > { %1347 = vrot.lane.b32.xlu1 %v1342_v18, %s1938_s12 }
 0xbda   : > { %v1348_v19 = vpop.permute.xlu1 %1347 }
 0xbdb   : > { %1350 = vst.msk [vmem:[%s2113_s19] sm:$0xff] %vm582_vm1, %v1348_v19 }
 0xbdc PF: > { %s2340_s25 = sld [smem:[#allocation13_spill]]  ;;  %s2341_s26 = sld [smem:[#allocation22_spill]] }
 0xbdd   : > { %s2343_s13 = sld [smem:[#allocation23_spill]]  ;;  %s1370_s24 = sshll.u32 %s2111_s29, 4  ;;  %s1371_s24 = int_to_ptr.vmem [resolvable:$true] %s1370_s24 }
 0xbde   : > { %s1802_s16 = scalar_lea.vmem %s1371_s24, 128  ;;  %s1939_s14 = smov [#allocation4]  }
 0xbdf   : > { %p1803_p2 = scmp.ne.s32.totalorder %s1371_s24, %s1802_s16  ;;  %s1806_s17 = sshll.u32 %s1939_s14, 4  ;;  %s1807_s17 = int_to_ptr.vmem [resolvable:$false] %s1806_s17 }
 0xbe0   : > { %s1808_s22 = scalar_lea.vmem %s1807_s17, 256  ;;  %p1809_p6 = scmp.lt.s32.totalorder %s1371_s24, %s1807_s17 }
 0xbe1   : > { %p1804_p4 = pnand %p1803_p2, %p2060_p3  ;;  %p1810_p7 = scmp.lt.s32.totalorder %s1808_s22, %s1802_s16 }
 0xbe2   : > { %s1556_s15 = sshll.u32 %s2340_s25, 7  ;;  %s1352_s28 = scalar_lea.sflag [#allocation5], %s2341_s26 }
 0xbe3   : > { %s2217_s30 = scalar_lea.hbm %s2343_s13, %s1556_s15  ;;  %p1805_p5 = pneg %p1804_p4 }
 0xbe4   : > { %p1811_p8 = por %p1810_p7, %p1809_p6 }
 0xbe6   : > { %p1812_p10 = pnand %p1811_p8, %p1805_p5 }
 0xbe8   : > { %1815 = shalt.err (!%p1812_p10)
}
 0xbe9   : > { %s1816_s29 = scalar_lea.hbm %s2217_s30, 128  ;;  %s1820_s12 = scalar_lea.hbm %s2343_s13, 256 }
 0xbea   : > { %p1817_p11 = scmp.ne.s32.totalorder %s2217_s30, %s1816_s29  ;;  %p1821_p0 = scmp.lt.u32.totalorder %s2217_s30, %s2343_s13 }
 0xbeb   : > { %p1822_p1 = scmp.lt.u32.totalorder %s1820_s12, %s1816_s29  ;;  %p1824_p4 = scmp.lt.u32.totalorder %s1816_s29, %s2217_s30 }
 0xbec   : > { %p1818_p12 = pnand %p1817_p11, %p2060_p3 }
 0xbed   : > { %p1823_p2 = por %p1822_p1, %p1821_p0 }
 0xbee   : > { %p1819_p13 = pneg %p1818_p12 }
 0xbef   : > { %p1825_p5 = por %p1824_p4, %p1823_p2 }
 0xbf1   : > { %p1826_p6 = pnand %p1825_p5, %p1819_p13 }
 0xbf3   : > { %1829 = shalt.err (!%p1826_p6)
}
 0xbf4   : > { %1685 = dma.vmem_to_hbm [thread:$0]  (%p2060_p3), %s1371_s24, 128, %s2217_s30, %s1352_s28  }
 0xbf5   : > { %s2344_s17 = sld [smem:[#allocation24_spill]]  ;;  %s1383_s23 = sshll.u32 %s2113_s19, 4  ;;  %s1384_s23 = int_to_ptr.vmem [resolvable:$true] %s1383_s23 }
 0xbf6   : > { %s1357_s29 = scalar_lea.sflag [#allocation7], %s2341_s26  ;;  %s1830_s18 = scalar_lea.vmem %s1384_s23, 128 }
 0xbf7   : > { %p1831_p7 = scmp.ne.s32.totalorder %s1384_s23, %s1830_s18  ;;  %s1940_s12 = smov [#allocation6]  }
 0xbf8   : > { %s1834_s20 = sshll.u32 %s1940_s12, 4  ;;  %s1835_s20 = int_to_ptr.vmem [resolvable:$false] %s1834_s20 }
 0xbf9   : > { %p1832_p8 = pnand %p1831_p7, %p2060_p3  ;;  %s1836_s21 = scalar_lea.vmem %s1835_s20, 256 }
 0xbfa   : > { %p1837_p11 = scmp.lt.s32.totalorder %s1384_s23, %s1835_s20  ;;  %p1838_p12 = scmp.lt.s32.totalorder %s1836_s21, %s1830_s18 }
 0xbfb   : > { %s2243_s22 = scalar_lea.hbm %s2344_s17, %s1556_s15  ;;  %p1833_p10 = pneg %p1832_p8 }
 0xbfc   : > { %p1839_p13 = por %p1838_p12, %p1837_p11 }
 0xbfe   : > { %p1840_p0 = pnand %p1839_p13, %p1833_p10 }
 0xc00   : > { %1843 = shalt.err (!%p1840_p0)
}
 0xc01   : > { %s1844_s19 = scalar_lea.hbm %s2243_s22, 128  ;;  %s1848_s15 = scalar_lea.hbm %s2344_s17, 256 }
 0xc02   : > { %p1845_p1 = scmp.ne.s32.totalorder %s2243_s22, %s1844_s19  ;;  %p1849_p5 = scmp.lt.u32.totalorder %s2243_s22, %s2344_s17 }
 0xc03   : > { %p1850_p6 = scmp.lt.u32.totalorder %s1848_s15, %s1844_s19  ;;  %p1852_p8 = scmp.lt.u32.totalorder %s1844_s19, %s2243_s22 }
 0xc04   : > { %p1846_p2 = pnand %p1845_p1, %p2060_p3 }
 0xc05   : > { %p1851_p7 = por %p1850_p6, %p1849_p5 }
 0xc06   : > { %p1847_p4 = pneg %p1846_p2 }
 0xc07   : > { %p1853_p10 = por %p1852_p8, %p1851_p7 }
 0xc09   : > { %p1854_p11 = pnand %p1853_p10, %p1847_p4 }
 0xc0b   : > { %1857 = shalt.err (!%p1854_p11)
}
 0xc0c   : > { %1686 = dma.vmem_to_hbm [thread:$0]  (%p2060_p3), %s1384_s23, 128, %s2243_s22, %s1357_s29  }
 0xc0d PF: > { %s2345_s28 = sld [smem:[#allocation16_spill]]  ;;  %s2346_s16 = sld [smem:[#allocation10_spill]] }
 0xc13   : > { %p1696_p12 = scmp.ge.s32.totalorder %s2345_s28, 2  ;;  %s1395_s18 = sand.u32 1, %s2346_s16  }
 0xc14   : > { %s1396_s12 = scalar_lea.sflag [#allocation5], %s1395_s18 }
 0xc15   : > { %p1690_p13 = pnand %p1696_p12, %p2070_p9 }
 0xc17   : > { %1891 = dma.done.wait (!%p1690_p13), %s1396_s12, 128  }
 0xc18   : > { %1893 = vsyncadd (!%p1690_p13), %s1396_s12, 4294967168  ;;  %s1405_s20 = scalar_lea.sflag [#allocation7], %s1395_s18 }
 0xc19   : > { %1895 = dma.done.wait (!%p1690_p13), %s1405_s20, 128  }
 0xc1a   : > { %1897 = vsyncadd (!%p1690_p13), %s1405_s20, 4294967168  ;;  %s30_s15 = sadd.s32 1, %s2345_s28   ;;  %s2348_s25 = sld [smem:[#allocation11_spill]] }
 0xc1b   : > { %p27_p0 = scmp.ge.s32.totalorder %s30_s15, 10   ;;  %s2349_s26 = sld [smem:[#allocation12_spill]] }
 0xc1c   : > { %s2350_s27 = sld [smem:[#allocation21_spill]]  ;;  %s2351_s28 = sld [smem:[#allocation14_spill]] }
 0xc1d   : > { %s2352_s29 = sld [smem:[#allocation15_spill]]  ;;  %s2353_s30 = sld [smem:[#allocation17_spill]] }
 0xc1e   : > { %s2354_s14 = sld [smem:[#allocation19_spill]]  ;;  %29 = sbr.rel (!%p27_p0) target bundleno = 10 (0xa), region = 137 }
 0xc25   :  { %1410 = vsyncpa [#allocation5], 1 }
 0xc26   :  { %1412 = vsyncpa [#allocation5 + $0x1], 1 }
 0xc27   :  { %1413 = vsyncpa [#allocation7], 1 }
 0xc28   :  { %1415 = vsyncpa [#allocation7 + $0x1], 1 }

</bundles_post_ra>
